<compile_context>
chip_gen: v5e
topology: v5e:2x2
jax: 0.10.0
libtpu: 0.0.40
codegen_flags: <defaults>
</compile_context>

<pallas_src>
import math
import functools

import jax
import jax.numpy as jnp
from jax import lax
from jax.experimental import pallas as pl
from jax.experimental.pallas import tpu as pltpu


# ----------------------------------------------------------------------------
# Helpers mirroring the PyTorch reference (shape-only glue, plain JAX)
# ----------------------------------------------------------------------------
def calc_ind(sf, ef):
    if sf == 0:
        start_ind = 0
    else:
        start_ind = 4 * (sf - 1) * (sf - 1) + 4 * (sf - 1) + 1
    end_ind = 4 * ef * ef + 4 * ef + 1
    return start_ind, end_ind, end_ind - start_ind


def make_coord(shape):
    """Grid-center coordinates in [-1, 1], flattened to (prod(shape), len(shape))."""
    seqs = []
    for n in shape:
        r = 1.0 / n
        seqs.append(-1.0 + r + 2.0 * r * jnp.arange(n, dtype=jnp.float32))
    grid = jnp.stack(jnp.meshgrid(*seqs, indexing="ij"), axis=-1)
    return grid.reshape(-1, len(shape))


def fourier_column_iter(x, y, sf, ef):
    """Yield basis columns in the exact Embedder.embed_fns[start:end] ordering
    for calc_ind(sf, ef).  x, y are already scaled by omega; every column has
    the same shape as x.  Transcendentals are deduped: only sin/cos of f*x and
    f*y for f = 1..ef hit the EUP; every product column is one VPU multiply."""
    sx = {f: jnp.sin(f * x) for f in range(1, ef + 1)}
    cx = {f: jnp.cos(f * x) for f in range(1, ef + 1)}
    sy = {f: jnp.sin(f * y) for f in range(1, ef + 1)}
    cy = {f: jnp.cos(f * y) for f in range(1, ef + 1)}
    p_fns = (
        lambda fa, fb: cx[fa] * cy[fb],
        lambda fa, fb: cx[fa] * sy[fb],
        lambda fa, fb: sx[fa] * cy[fb],
        lambda fa, fb: sx[fa] * sy[fb],
    )
    s2 = math.sqrt(2.0)
    if sf == 0:
        yield jnp.ones_like(x)
        f_start = 1
    else:
        f_start = sf
    for f in range(f_start, ef + 1):
        yield s2 * sx[f]
        yield s2 * cx[f]
        yield s2 * sy[f]
        yield s2 * cy[f]
        for ft in range(1, f):
            for p in p_fns:
                yield 2.0 * p(f, ft)
                yield 2.0 * p(ft, f)
        for p in p_fns:
            yield 2.0 * p(f, f)


def gather_corners(feat, h, w, q_pad, proj_dtype=jnp.float32):
    """Nearest grid_sample + feat_coord logic of query_F.  Indices depend only
    on shapes, so this is index-precompute glue; the hot math stays in the
    kernel.  The query axis is padded to q_pad by edge-replicating the last
    coordinate BEFORE the gather so the dominant proj tensor never goes
    through a separate jnp.pad pass.
    Returns proj4 (4, N, C, q_pad), rel4 (4, 2, q_pad), w4 (4, q_pad)."""
    N, C, H, W = feat.shape
    coord = make_coord((h, w))                       # (Q, 2): [:,0]=h-dir, [:,1]=w-dir
    Q = coord.shape[0]
    if q_pad > Q:
        coord = jnp.concatenate(
            [coord, jnp.broadcast_to(coord[-1:, :], (q_pad - Q, 2))], axis=0)
    rx = 1.0 / H
    ry = 1.0 / W
    eps = 1e-6
    feat_c = feat.astype(proj_dtype)
    proj_list, rel_list, area_list = [], [], []
    for vx in (-1, 1):
        for vy in (-1, 1):
            cx = jnp.clip(coord[:, 0] + vx * rx + eps, -1 + 1e-6, 1 - 1e-6)
            cy = jnp.clip(coord[:, 1] + vy * ry + eps, -1 + 1e-6, 1 - 1e-6)
            # grid_sample(nearest, align_corners=False) index math (after flip(-1)).
            # TODO(synk): jnp.round is half-to-even; PyTorch nearest rounding can
            # differ at exact .5 boundaries (mostly guarded by the +1e-6 shift).
            ih = jnp.clip(jnp.round(((cx + 1.0) * H - 1.0) / 2.0).astype(jnp.int32), 0, H - 1)
            iw = jnp.clip(jnp.round(((cy + 1.0) * W - 1.0) / 2.0).astype(jnp.int32), 0, W - 1)
            proj_list.append(feat_c[:, :, ih, iw])                   # (N, C, Qp), query-last
            qh = -1.0 + 1.0 / H + 2.0 * ih.astype(jnp.float32) / H   # nearest LR cell centers
            qw = -1.0 + 1.0 / W + 2.0 * iw.astype(jnp.float32) / W
            relx = (coord[:, 0] - qh) * H
            rely = (coord[:, 1] - qw) * W
            rel_list.append(jnp.stack([relx, rely], axis=0))         # (2, Qp)
            area_list.append(jnp.abs(relx * rely) + 1e-9)            # (Qp,)
    tot = area_list[0] + area_list[1] + area_list[2] + area_list[3]
    # local-ensemble 0<->3 / 1<->2 swap of query_F: weight for corner v is the
    # area of the diagonally opposite corner.
    w_list = [area_list[3 - v] / tot for v in range(4)]
    return (jnp.stack(proj_list, axis=0),
            jnp.stack(rel_list, axis=0).astype(jnp.float32),
            jnp.stack(w_list, axis=0).astype(jnp.float32))


# ----------------------------------------------------------------------------
# Pallas kernel: Fourier series evaluation + local-ensemble area weighting
# ----------------------------------------------------------------------------
def _render_kernel(proj_ref, rel_ref, w_ref, out_ref, *, sf, ef, omega):
    # proj_ref: (1, 1, 3, dim, S, 128)   rel_ref: (1, 2, S, 128)
    # w_ref:    (1, S, 128)              out_ref: (1, 3, S, 128)
    v = pl.program_id(2)               # corner reduction step (last grid axis)

    @pl.when(v == 0)
    def _():
        out_ref[...] = jnp.zeros_like(out_ref)

    x = rel_ref[0, 0] * omega          # (S, 128) -- full (8,128) vregs
    y = rel_ref[0, 1] * omega

    dim = proj_ref.shape[3]
    zero = jnp.zeros(x.shape, jnp.float32)
    acc = [zero, zero, zero]           # single corner live: 3 (S,128) f32 accumulators
    d = 0
    for col in fourier_column_iter(x, y, sf, ef):
        # per-column FMA: pure VALU, no basis concat / cross-sublane reduce
        for c in range(3):
            acc[c] = acc[c] + proj_ref[0, 0, c, d].astype(jnp.float32) * col
        d += 1
    assert d == dim, (d, dim)

    wgt = w_ref[0]                     # precomputed area_{3-v} / tot_area
    for c in range(3):
        out_ref[0, c] = out_ref[0, c] + acc[c] * wgt


def fourier_render(feat, h, w, sf, ef, omega=0.5 * math.pi,
                   proj_dtype=jnp.bfloat16, q_tile_cap=8192):
    """Fourier_render_patch_int.forward: feat (N, 3*dim, H_lr, W_lr) -> (N, 3, h, w)."""
    N, C, H, W = feat.shape
    _, _, dim = calc_ind(sf, ef)
    assert C == 3 * dim

    proj_dtype = jnp.dtype(proj_dtype)
    itemsize = proj_dtype.itemsize
    LANE = 128
    SUB = 8 if itemsize >= 4 else 16        # packed dtypes tile sublanes in pairs
    base = SUB * LANE
    Q = h * w

    # Generation-aware VMEM budget -> largest query tile (multiple of `base`).
    try:
        vmem_cap = int(pltpu.get_tpu_info().vmem_capacity_bytes)
    except Exception:                       # conservative (v7x-sized) fallback
        vmem_cap = 64 * 2 ** 20
    budget = min(vmem_cap // 2, 48 * 2 ** 20)

    def tile_bytes(tq):                     # double-buffered per-step residency
        proj_blk = 3 * dim * tq * itemsize
        rel_blk = 2 * tq * 4
        w_blk = tq * 4
        out_blk = 3 * tq * 4
        return 2 * (proj_blk + rel_blk + w_blk + out_blk)

    tq = base
    for mult in (8, 4, 2, 1):
        cand = mult * base
        if cand <= max(q_tile_cap, base) and tile_bytes(cand) <= budget:
            tq = cand
            break
    q_ceil = -(-Q // base) * base
    tq = min(tq, q_ceil)
    Qp = -(-Q // tq) * tq
    S_tot, S_blk = Qp // LANE, tq // LANE

    # Corner gather (coefficients in bf16/f32) + rel coords + ensemble weights.
    proj4, rel4, w4 = gather_corners(feat, h, w, Qp, proj_dtype)
    proj4 = proj4.reshape(4, N, 3, dim, S_tot, LANE)     # free reshape of minor axis
    rel4 = rel4.reshape(4, 2, S_tot, LANE)
    w4 = w4.reshape(4, S_tot, LANE)

    vmem_limit = int(min(vmem_cap * 3 // 4, max(32 * 2 ** 20, 2 * tile_bytes(tq))))
    cost = pl.CostEstimate(
        flops=int(4 * N * Qp * (7 * dim + 8)),
        transcendentals=int(4 * N * Qp * 4 * max(ef, 0)),
        bytes_accessed=int(4 * N * 3 * dim * Qp * itemsize
                           + N * (4 * 2 + 4) * Qp * 4 + N * 3 * Qp * 4),
    )

    out = pl.pallas_call(
        functools.partial(_render_kernel, sf=sf, ef=ef, omega=omega),
        out_shape=jax.ShapeDtypeStruct((N, 3, S_tot, LANE), jnp.float32),
        grid_spec=pltpu.PrefetchScalarGridSpec(
            num_scalar_prefetch=0,
            grid=(N, S_tot // S_blk, 4),                 # corner axis last = reduction
            in_specs=[
                pl.BlockSpec((1, 1, 3, dim, S_blk, LANE),
                             lambda n, q, v: (v, n, 0, 0, q, 0)),
                pl.BlockSpec((1, 2, S_blk, LANE), lambda n, q, v: (v, 0, q, 0)),
                pl.BlockSpec((1, S_blk, LANE), lambda n, q, v: (v, q, 0)),
            ],
            out_specs=pl.BlockSpec((1, 3, S_blk, LANE), lambda n, q, v: (n, 0, q, 0)),
        ),
        compiler_params=pltpu.CompilerParams(
            dimension_semantics=("parallel", "parallel", "arbitrary"),
            vmem_limit_bytes=vmem_limit),
        cost_estimate=cost,
    )(proj4, rel4, w4)

    out = out.reshape(N, 3, Qp)
    if Qp != Q:
        out = out[:, :, :Q]
    return out.reshape(N, 3, h, w)


# ----------------------------------------------------------------------------
# CIR_SR_net_lrbase forward (default ret_f=ret_all=False, base render fused)
# ----------------------------------------------------------------------------
def srnet_forward(img, w_conv, b_conv):
    # TODO(synk): srnet_spec is external (models.make); substituting a deterministic
    # 3x3 conv stand-in computed in plain JAX (parameter glue, not the hot path).
    y = lax.conv_general_dilated(
        img, w_conv, window_strides=(1, 1), padding="SAME",
        dimension_numbers=("NCHW", "OIHW", "NCHW"))
    return y + b_conv[None, :, None, None]


def channel_extract(feature, sf, ef, max_freq):
    """myutils.channelExtract: per-color slice of the frequency blocks [sf..ef]."""
    D = 4 * max_freq * max_freq + 4 * max_freq + 1
    s, e, _ = calc_ind(sf, ef)
    return jnp.concatenate([feature[:, c * D + s:c * D + e] for c in range(3)], axis=1)


def cir_sr_net_lrbase_forward(img_lr, w_conv, b_conv, h, w, max_freq,
                              proj_dtype=jnp.bfloat16):
    """rend_base + rend_left computed as ONE fused sf=0..max_freq render: the
    render is linear in the coefficients and basis(0..ef) = [1] ++ basis(1..ef)
    with identical corner weights, so replacing each color's constant
    coefficient with (img_lr - feature_base) gives the same sum exactly."""
    N, _, H, W = img_lr.shape
    D = 4 * max_freq * max_freq + 4 * max_freq + 1
    feature = srnet_forward(img_lr, w_conv, b_conv)            # (N, 3*D, H, W)
    f5 = feature.reshape(N, 3, D, H, W)
    fused = f5.at[:, :, 0].set(img_lr - f5[:, :, 0])           # const coef <- img - base
    fused = fused.reshape(N, 3 * D, H, W)
    return fourier_render(fused, h, w, sf=0, ef=max_freq, proj_dtype=proj_dtype)


# ----------------------------------------------------------------------------
# Pure-JAX reference (unfused, step-by-step like the PyTorch module)
# ----------------------------------------------------------------------------
def fourier_render_reference(feat, h, w, sf, ef, omega=0.5 * math.pi):
    N, C, H, W = feat.shape
    _, _, dim = calc_ind(sf, ef)
    proj4, rel4, _ = gather_corners(feat, h, w, h * w, jnp.float32)
    preds, areas = [], []
    for v in range(4):
        rx = rel4[v, 0:1]
        ry = rel4[v, 1:2]
        basis = jnp.concatenate(
            list(fourier_column_iter(rx * omega, ry * omega, sf, ef)), axis=0)
        p = proj4[v]                                               # (N, C, Q)
        chans = [jnp.sum(p[:, c * dim:(c + 1) * dim, :] * basis[None], axis=1, keepdims=True)
                 for c in range(3)]
        preds.append(jnp.concatenate(chans, axis=1))               # (N, 3, Q)
        areas.append(jnp.abs(rx * ry) + 1e-9)                      # (1, Q)
    tot = areas[0] + areas[1] + areas[2] + areas[3]
    weights = [areas[3], areas[2], areas[1], areas[0]]
    ret = 0.0
    for pv, wv in zip(preds, weights):
        ret = ret + pv * (wv / tot)[None]
    return ret.reshape(N, 3, h, w)


def cir_reference(img_lr, w_conv, b_conv, h, w, max_freq):
    feature = srnet_forward(img_lr, w_conv, b_conv)
    feature_base = channel_extract(feature, 0, 0, max_freq)
    feature_left = channel_extract(feature, 1, max_freq, max_freq)
    return (fourier_render_reference(img_lr - feature_base, h, w, 0, 0)
            + fourier_render_reference(feature_left, h, w, 1, max_freq))


if __name__ == "__main__":
    max_freq = 2
    D = 4 * max_freq * max_freq + 4 * max_freq + 1     # 25 coeffs per color
    N, H_lr, W_lr = 2, 8, 8
    h, w = 16, 16

    key = jax.random.PRNGKey(0)
    k1, k2, k3 = jax.random.split(key, 3)
    img_lr = jax.random.uniform(k1, (N, 3, H_lr, W_lr), dtype=jnp.float32)
    w_conv = 0.05 * jax.random.normal(k2, (3 * D, 3, 3, 3), dtype=jnp.float32)
    b_conv = 0.01 * jax.random.normal(k3, (3 * D,), dtype=jnp.float32)

    ref = jax.block_until_ready(cir_reference(img_lr, w_conv, b_conv, h, w, max_freq))

    # Strict numerical check: f32 coefficient stream.
    out_f32 = jax.block_until_ready(
        cir_sr_net_lrbase_forward(img_lr, w_conv, b_conv, h, w, max_freq,
                                  proj_dtype=jnp.float32))
    assert out_f32.shape == (N, 3, h, w), out_f32.shape
    assert bool(jnp.all(jnp.isfinite(out_f32)))
    err32 = float(jnp.max(jnp.abs(out_f32 - ref)))
    assert bool(jnp.allclose(out_f32, ref, atol=1e-3, rtol=1e-3)), err32

    # Default (HBM-bandwidth-optimized) path: bf16 coefficient stream, f32 accumulation.
    out_bf16 = jax.block_until_ready(
        cir_sr_net_lrbase_forward(img_lr, w_conv, b_conv, h, w, max_freq))
    assert out_bf16.shape == (N, 3, h, w), out_bf16.shape
    assert bool(jnp.all(jnp.isfinite(out_bf16)))
    err16 = float(jnp.max(jnp.abs(out_bf16 - ref)))
    assert bool(jnp.allclose(out_bf16, ref, atol=3e-2, rtol=3e-2)), err16

    print("KERNEL_OK")
</pallas_src>

<mosaic_0001>
module attributes {stable_mosaic.version = 11 : i64} {
  func.func @_render_kernel(%arg0: i32, %arg1: i32, %arg2: i32, %arg3: memref<1x1x3x25x8x128xf32, #tpu.memory_space<vmem>>, %arg4: memref<1x2x8x128xf32, #tpu.memory_space<vmem>>, %arg5: memref<1x8x128xf32, #tpu.memory_space<vmem>>, %arg6: memref<1x3x8x128xf32, #tpu.memory_space<vmem>>) attributes {dimension_semantics = [#tpu.dimension_semantics<parallel>, #tpu.dimension_semantics<parallel>, #tpu.dimension_semantics<arbitrary>], iteration_bounds = array<i64: 2, 1, 4>, scalar_prefetch = 0 : i64, scratch_operands = 0 : i64, tpu.core_type = #tpu.core_type<tc>, window_params = [{transform_indices = @transform_0, window_bounds = array<i64: 1, 1, 3, 25, 8, 128>}, {transform_indices = @transform_1, window_bounds = array<i64: 1, 2, 8, 128>}, {transform_indices = @transform_2, window_bounds = array<i64: 1, 8, 128>}, {transform_indices = @transform_3, window_bounds = array<i64: 1, 3, 8, 128>}]} {
    %c0_i32 = arith.constant 0 : i32
    %0 = arith.cmpi eq, %arg2, %c0_i32 : i32
    %1 = arith.extui %0 : i1 to i32
    %c0_i32_0 = arith.constant 0 : i32
    %2 = arith.cmpi ne, %1, %c0_i32_0 : i32
    scf.if %2 {
      %cst_496 = arith.constant 0.000000e+00 : f32
      %424 = vector.broadcast %cst_496 : f32 to vector<1x3x8x128xf32>
      %c0_497 = arith.constant 0 : index
      %c0_498 = arith.constant 0 : index
      %c0_499 = arith.constant 0 : index
      %c0_500 = arith.constant 0 : index
      %425 = vector.load %arg6[%c0_497, %c0_498, %c0_499, %c0_500] : memref<1x3x8x128xf32, #tpu.memory_space<vmem>>, vector<1x3x8x128xf32>
      tpu.vector_store %arg6[%c0_497, %c0_498, %c0_499, %c0_500], %424 {strides = array<i32>} : memref<1x3x8x128xf32, #tpu.memory_space<vmem>>, vector<1x3x8x128xf32>,
    } else {
    }
    %c0 = arith.constant 0 : index
    %c0_1 = arith.constant 0 : index
    %c0_2 = arith.constant 0 : index
    %c0_3 = arith.constant 0 : index
    %3 = vector.load %arg4[%c0, %c0_1, %c0_2, %c0_3] : memref<1x2x8x128xf32, #tpu.memory_space<vmem>>, vector<1x1x8x128xf32>
    %4 = vector.shape_cast %3 : vector<1x1x8x128xf32> to vector<8x128xf32>
    %cst = arith.constant 1.57079637 : f32
    %5 = vector.broadcast %cst : f32 to vector<8x128xf32>
    %6 = arith.mulf %4, %5 : vector<8x128xf32>
    %c0_4 = arith.constant 0 : index
    %c1 = arith.constant 1 : index
    %c0_5 = arith.constant 0 : index
    %c0_6 = arith.constant 0 : index
    %7 = vector.load %arg4[%c0_4, %c1, %c0_5, %c0_6] : memref<1x2x8x128xf32, #tpu.memory_space<vmem>>, vector<1x1x8x128xf32>
    %8 = vector.shape_cast %7 : vector<1x1x8x128xf32> to vector<8x128xf32>
    %cst_7 = arith.constant 1.57079637 : f32
    %9 = vector.broadcast %cst_7 : f32 to vector<8x128xf32>
    %10 = arith.mulf %8, %9 : vector<8x128xf32>
    %cst_8 = arith.constant 0.000000e+00 : f32
    %11 = vector.broadcast %cst_8 : f32 to vector<8x128xf32>
    %cst_9 = arith.constant 1.000000e+00 : f32
    %12 = vector.broadcast %cst_9 : f32 to vector<8x128xf32>
    %13 = arith.mulf %12, %6 : vector<8x128xf32>
    %14 = math.sin %13 : vector<8x128xf32>
    %cst_10 = arith.constant 2.000000e+00 : f32
    %15 = vector.broadcast %cst_10 : f32 to vector<8x128xf32>
    %16 = arith.mulf %15, %6 : vector<8x128xf32>
    %17 = math.sin %16 : vector<8x128xf32>
    %cst_11 = arith.constant 1.000000e+00 : f32
    %18 = vector.broadcast %cst_11 : f32 to vector<8x128xf32>
    %19 = arith.mulf %18, %6 : vector<8x128xf32>
    %20 = math.cos %19 : vector<8x128xf32>
    %cst_12 = arith.constant 2.000000e+00 : f32
    %21 = vector.broadcast %cst_12 : f32 to vector<8x128xf32>
    %22 = arith.mulf %21, %6 : vector<8x128xf32>
    %23 = math.cos %22 : vector<8x128xf32>
    %cst_13 = arith.constant 1.000000e+00 : f32
    %24 = vector.broadcast %cst_13 : f32 to vector<8x128xf32>
    %25 = arith.mulf %24, %10 : vector<8x128xf32>
    %26 = math.sin %25 : vector<8x128xf32>
    %cst_14 = arith.constant 2.000000e+00 : f32
    %27 = vector.broadcast %cst_14 : f32 to vector<8x128xf32>
    %28 = arith.mulf %27, %10 : vector<8x128xf32>
    %29 = math.sin %28 : vector<8x128xf32>
    %cst_15 = arith.constant 1.000000e+00 : f32
    %30 = vector.broadcast %cst_15 : f32 to vector<8x128xf32>
    %31 = arith.mulf %30, %10 : vector<8x128xf32>
    %32 = math.cos %31 : vector<8x128xf32>
    %cst_16 = arith.constant 2.000000e+00 : f32
    %33 = vector.broadcast %cst_16 : f32 to vector<8x128xf32>
    %34 = arith.mulf %33, %10 : vector<8x128xf32>
    %35 = math.cos %34 : vector<8x128xf32>
    %cst_17 = arith.constant 1.000000e+00 : f32
    %36 = vector.broadcast %cst_17 : f32 to vector<8x128xf32>
    %c0_18 = arith.constant 0 : index
    %c0_19 = arith.constant 0 : index
    %c0_20 = arith.constant 0 : index
    %c0_21 = arith.constant 0 : index
    %c0_22 = arith.constant 0 : index
    %c0_23 = arith.constant 0 : index
    %37 = vector.load %arg3[%c0_18, %c0_19, %c0_20, %c0_21, %c0_22, %c0_23] : memref<1x1x3x25x8x128xf32, #tpu.memory_space<vmem>>, vector<1x1x1x1x8x128xf32>
    %38 = vector.shape_cast %37 : vector<1x1x1x1x8x128xf32> to vector<8x128xf32>
    %39 = arith.mulf %38, %36 : vector<8x128xf32>
    %40 = arith.addf %11, %39 : vector<8x128xf32>
    %c0_24 = arith.constant 0 : index
    %c0_25 = arith.constant 0 : index
    %c1_26 = arith.constant 1 : index
    %c0_27 = arith.constant 0 : index
    %c0_28 = arith.constant 0 : index
    %c0_29 = arith.constant 0 : index
    %41 = vector.load %arg3[%c0_24, %c0_25, %c1_26, %c0_27, %c0_28, %c0_29] : memref<1x1x3x25x8x128xf32, #tpu.memory_space<vmem>>, vector<1x1x1x1x8x128xf32>
    %42 = vector.shape_cast %41 : vector<1x1x1x1x8x128xf32> to vector<8x128xf32>
    %43 = arith.mulf %42, %36 : vector<8x128xf32>
    %44 = arith.addf %11, %43 : vector<8x128xf32>
    %c0_30 = arith.constant 0 : index
    %c0_31 = arith.constant 0 : index
    %c2 = arith.constant 2 : index
    %c0_32 = arith.constant 0 : index
    %c0_33 = arith.constant 0 : index
    %c0_34 = arith.constant 0 : index
    %45 = vector.load %arg3[%c0_30, %c0_31, %c2, %c0_32, %c0_33, %c0_34] : memref<1x1x3x25x8x128xf32, #tpu.memory_space<vmem>>, vector<1x1x1x1x8x128xf32>
    %46 = vector.shape_cast %45 : vector<1x1x1x1x8x128xf32> to vector<8x128xf32>
    %47 = arith.mulf %46, %36 : vector<8x128xf32>
    %48 = arith.addf %11, %47 : vector<8x128xf32>
    %cst_35 = arith.constant 1.41421354 : f32
    %49 = vector.broadcast %cst_35 : f32 to vector<8x128xf32>
    %50 = arith.mulf %49, %14 : vector<8x128xf32>
    %c0_36 = arith.constant 0 : index
    %c0_37 = arith.constant 0 : index
    %c0_38 = arith.constant 0 : index
    %c1_39 = arith.constant 1 : index
    %c0_40 = arith.constant 0 : index
    %c0_41 = arith.constant 0 : index
    %51 = vector.load %arg3[%c0_36, %c0_37, %c0_38, %c1_39, %c0_40, %c0_41] : memref<1x1x3x25x8x128xf32, #tpu.memory_space<vmem>>, vector<1x1x1x1x8x128xf32>
    %52 = vector.shape_cast %51 : vector<1x1x1x1x8x128xf32> to vector<8x128xf32>
    %53 = arith.mulf %52, %50 : vector<8x128xf32>
    %54 = arith.addf %40, %53 : vector<8x128xf32>
    %c0_42 = arith.constant 0 : index
    %c0_43 = arith.constant 0 : index
    %c1_44 = arith.constant 1 : index
    %c1_45 = arith.constant 1 : index
    %c0_46 = arith.constant 0 : index
    %c0_47 = arith.constant 0 : index
    %55 = vector.load %arg3[%c0_42, %c0_43, %c1_44, %c1_45, %c0_46, %c0_47] : memref<1x1x3x25x8x128xf32, #tpu.memory_space<vmem>>, vector<1x1x1x1x8x128xf32>
    %56 = vector.shape_cast %55 : vector<1x1x1x1x8x128xf32> to vector<8x128xf32>
    %57 = arith.mulf %56, %50 : vector<8x128xf32>
    %58 = arith.addf %44, %57 : vector<8x128xf32>
    %c0_48 = arith.constant 0 : index
    %c0_49 = arith.constant 0 : index
    %c2_50 = arith.constant 2 : index
    %c1_51 = arith.constant 1 : index
    %c0_52 = arith.constant 0 : index
    %c0_53 = arith.constant 0 : index
    %59 = vector.load %arg3[%c0_48, %c0_49, %c2_50, %c1_51, %c0_52, %c0_53] : memref<1x1x3x25x8x128xf32, #tpu.memory_space<vmem>>, vector<1x1x1x1x8x128xf32>
    %60 = vector.shape_cast %59 : vector<1x1x1x1x8x128xf32> to vector<8x128xf32>
    %61 = arith.mulf %60, %50 : vector<8x128xf32>
    %62 = arith.addf %48, %61 : vector<8x128xf32>
    %cst_54 = arith.constant 1.41421354 : f32
    %63 = vector.broadcast %cst_54 : f32 to vector<8x128xf32>
    %64 = arith.mulf %63, %20 : vector<8x128xf32>
    %c0_55 = arith.constant 0 : index
    %c0_56 = arith.constant 0 : index
    %c0_57 = arith.constant 0 : index
    %c2_58 = arith.constant 2 : index
    %c0_59 = arith.constant 0 : index
    %c0_60 = arith.constant 0 : index
    %65 = vector.load %arg3[%c0_55, %c0_56, %c0_57, %c2_58, %c0_59, %c0_60] : memref<1x1x3x25x8x128xf32, #tpu.memory_space<vmem>>, vector<1x1x1x1x8x128xf32>
    %66 = vector.shape_cast %65 : vector<1x1x1x1x8x128xf32> to vector<8x128xf32>
    %67 = arith.mulf %66, %64 : vector<8x128xf32>
    %68 = arith.addf %54, %67 : vector<8x128xf32>
    %c0_61 = arith.constant 0 : index
    %c0_62 = arith.constant 0 : index
    %c1_63 = arith.constant 1 : index
    %c2_64 = arith.constant 2 : index
    %c0_65 = arith.constant 0 : index
    %c0_66 = arith.constant 0 : index
    %69 = vector.load %arg3[%c0_61, %c0_62, %c1_63, %c2_64, %c0_65, %c0_66] : memref<1x1x3x25x8x128xf32, #tpu.memory_space<vmem>>, vector<1x1x1x1x8x128xf32>
    %70 = vector.shape_cast %69 : vector<1x1x1x1x8x128xf32> to vector<8x128xf32>
    %71 = arith.mulf %70, %64 : vector<8x128xf32>
    %72 = arith.addf %58, %71 : vector<8x128xf32>
    %c0_67 = arith.constant 0 : index
    %c0_68 = arith.constant 0 : index
    %c2_69 = arith.constant 2 : index
    %c2_70 = arith.constant 2 : index
    %c0_71 = arith.constant 0 : index
    %c0_72 = arith.constant 0 : index
    %73 = vector.load %arg3[%c0_67, %c0_68, %c2_69, %c2_70, %c0_71, %c0_72] : memref<1x1x3x25x8x128xf32, #tpu.memory_space<vmem>>, vector<1x1x1x1x8x128xf32>
    %74 = vector.shape_cast %73 : vector<1x1x1x1x8x128xf32> to vector<8x128xf32>
    %75 = arith.mulf %74, %64 : vector<8x128xf32>
    %76 = arith.addf %62, %75 : vector<8x128xf32>
    %cst_73 = arith.constant 1.41421354 : f32
    %77 = vector.broadcast %cst_73 : f32 to vector<8x128xf32>
    %78 = arith.mulf %77, %26 : vector<8x128xf32>
    %c0_74 = arith.constant 0 : index
    %c0_75 = arith.constant 0 : index
    %c0_76 = arith.constant 0 : index
    %c3 = arith.constant 3 : index
    %c0_77 = arith.constant 0 : index
    %c0_78 = arith.constant 0 : index
    %79 = vector.load %arg3[%c0_74, %c0_75, %c0_76, %c3, %c0_77, %c0_78] : memref<1x1x3x25x8x128xf32, #tpu.memory_space<vmem>>, vector<1x1x1x1x8x128xf32>
    %80 = vector.shape_cast %79 : vector<1x1x1x1x8x128xf32> to vector<8x128xf32>
    %81 = arith.mulf %80, %78 : vector<8x128xf32>
    %82 = arith.addf %68, %81 : vector<8x128xf32>
    %c0_79 = arith.constant 0 : index
    %c0_80 = arith.constant 0 : index
    %c1_81 = arith.constant 1 : index
    %c3_82 = arith.constant 3 : index
    %c0_83 = arith.constant 0 : index
    %c0_84 = arith.constant 0 : index
    %83 = vector.load %arg3[%c0_79, %c0_80, %c1_81, %c3_82, %c0_83, %c0_84] : memref<1x1x3x25x8x128xf32, #tpu.memory_space<vmem>>, vector<1x1x1x1x8x128xf32>
    %84 = vector.shape_cast %83 : vector<1x1x1x1x8x128xf32> to vector<8x128xf32>
    %85 = arith.mulf %84, %78 : vector<8x128xf32>
    %86 = arith.addf %72, %85 : vector<8x128xf32>
    %c0_85 = arith.constant 0 : index
    %c0_86 = arith.constant 0 : index
    %c2_87 = arith.constant 2 : index
    %c3_88 = arith.constant 3 : index
    %c0_89 = arith.constant 0 : index
    %c0_90 = arith.constant 0 : index
    %87 = vector.load %arg3[%c0_85, %c0_86, %c2_87, %c3_88, %c0_89, %c0_90] : memref<1x1x3x25x8x128xf32, #tpu.memory_space<vmem>>, vector<1x1x1x1x8x128xf32>
    %88 = vector.shape_cast %87 : vector<1x1x1x1x8x128xf32> to vector<8x128xf32>
    %89 = arith.mulf %88, %78 : vector<8x128xf32>
    %90 = arith.addf %76, %89 : vector<8x128xf32>
    %cst_91 = arith.constant 1.41421354 : f32
    %91 = vector.broadcast %cst_91 : f32 to vector<8x128xf32>
    %92 = arith.mulf %91, %32 : vector<8x128xf32>
    %c0_92 = arith.constant 0 : index
    %c0_93 = arith.constant 0 : index
    %c0_94 = arith.constant 0 : index
    %c4 = arith.constant 4 : index
    %c0_95 = arith.constant 0 : index
    %c0_96 = arith.constant 0 : index
    %93 = vector.load %arg3[%c0_92, %c0_93, %c0_94, %c4, %c0_95, %c0_96] : memref<1x1x3x25x8x128xf32, #tpu.memory_space<vmem>>, vector<1x1x1x1x8x128xf32>
    %94 = vector.shape_cast %93 : vector<1x1x1x1x8x128xf32> to vector<8x128xf32>
    %95 = arith.mulf %94, %92 : vector<8x128xf32>
    %96 = arith.addf %82, %95 : vector<8x128xf32>
    %c0_97 = arith.constant 0 : index
    %c0_98 = arith.constant 0 : index
    %c1_99 = arith.constant 1 : index
    %c4_100 = arith.constant 4 : index
    %c0_101 = arith.constant 0 : index
    %c0_102 = arith.constant 0 : index
    %97 = vector.load %arg3[%c0_97, %c0_98, %c1_99, %c4_100, %c0_101, %c0_102] : memref<1x1x3x25x8x128xf32, #tpu.memory_space<vmem>>, vector<1x1x1x1x8x128xf32>
    %98 = vector.shape_cast %97 : vector<1x1x1x1x8x128xf32> to vector<8x128xf32>
    %99 = arith.mulf %98, %92 : vector<8x128xf32>
    %100 = arith.addf %86, %99 : vector<8x128xf32>
    %c0_103 = arith.constant 0 : index
    %c0_104 = arith.constant 0 : index
    %c2_105 = arith.constant 2 : index
    %c4_106 = arith.constant 4 : index
    %c0_107 = arith.constant 0 : index
    %c0_108 = arith.constant 0 : index
    %101 = vector.load %arg3[%c0_103, %c0_104, %c2_105, %c4_106, %c0_107, %c0_108] : memref<1x1x3x25x8x128xf32, #tpu.memory_space<vmem>>, vector<1x1x1x1x8x128xf32>
    %102 = vector.shape_cast %101 : vector<1x1x1x1x8x128xf32> to vector<8x128xf32>
    %103 = arith.mulf %102, %92 : vector<8x128xf32>
    %104 = arith.addf %90, %103 : vector<8x128xf32>
    %105 = arith.mulf %20, %32 : vector<8x128xf32>
    %cst_109 = arith.constant 2.000000e+00 : f32
    %106 = vector.broadcast %cst_109 : f32 to vector<8x128xf32>
    %107 = arith.mulf %106, %105 : vector<8x128xf32>
    %c0_110 = arith.constant 0 : index
    %c0_111 = arith.constant 0 : index
    %c0_112 = arith.constant 0 : index
    %c5 = arith.constant 5 : index
    %c0_113 = arith.constant 0 : index
    %c0_114 = arith.constant 0 : index
    %108 = vector.load %arg3[%c0_110, %c0_111, %c0_112, %c5, %c0_113, %c0_114] : memref<1x1x3x25x8x128xf32, #tpu.memory_space<vmem>>, vector<1x1x1x1x8x128xf32>
    %109 = vector.shape_cast %108 : vector<1x1x1x1x8x128xf32> to vector<8x128xf32>
    %110 = arith.mulf %109, %107 : vector<8x128xf32>
    %111 = arith.addf %96, %110 : vector<8x128xf32>
    %c0_115 = arith.constant 0 : index
    %c0_116 = arith.constant 0 : index
    %c1_117 = arith.constant 1 : index
    %c5_118 = arith.constant 5 : index
    %c0_119 = arith.constant 0 : index
    %c0_120 = arith.constant 0 : index
    %112 = vector.load %arg3[%c0_115, %c0_116, %c1_117, %c5_118, %c0_119, %c0_120] : memref<1x1x3x25x8x128xf32, #tpu.memory_space<vmem>>, vector<1x1x1x1x8x128xf32>
    %113 = vector.shape_cast %112 : vector<1x1x1x1x8x128xf32> to vector<8x128xf32>
    %114 = arith.mulf %113, %107 : vector<8x128xf32>
    %115 = arith.addf %100, %114 : vector<8x128xf32>
    %c0_121 = arith.constant 0 : index
    %c0_122 = arith.constant 0 : index
    %c2_123 = arith.constant 2 : index
    %c5_124 = arith.constant 5 : index
    %c0_125 = arith.constant 0 : index
    %c0_126 = arith.constant 0 : index
    %116 = vector.load %arg3[%c0_121, %c0_122, %c2_123, %c5_124, %c0_125, %c0_126] : memref<1x1x3x25x8x128xf32, #tpu.memory_space<vmem>>, vector<1x1x1x1x8x128xf32>
    %117 = vector.shape_cast %116 : vector<1x1x1x1x8x128xf32> to vector<8x128xf32>
    %118 = arith.mulf %117, %107 : vector<8x128xf32>
    %119 = arith.addf %104, %118 : vector<8x128xf32>
    %120 = arith.mulf %20, %26 : vector<8x128xf32>
    %cst_127 = arith.constant 2.000000e+00 : f32
    %121 = vector.broadcast %cst_127 : f32 to vector<8x128xf32>
    %122 = arith.mulf %121, %120 : vector<8x128xf32>
    %c0_128 = arith.constant 0 : index
    %c0_129 = arith.constant 0 : index
    %c0_130 = arith.constant 0 : index
    %c6 = arith.constant 6 : index
    %c0_131 = arith.constant 0 : index
    %c0_132 = arith.constant 0 : index
    %123 = vector.load %arg3[%c0_128, %c0_129, %c0_130, %c6, %c0_131, %c0_132] : memref<1x1x3x25x8x128xf32, #tpu.memory_space<vmem>>, vector<1x1x1x1x8x128xf32>
    %124 = vector.shape_cast %123 : vector<1x1x1x1x8x128xf32> to vector<8x128xf32>
    %125 = arith.mulf %124, %122 : vector<8x128xf32>
    %126 = arith.addf %111, %125 : vector<8x128xf32>
    %c0_133 = arith.constant 0 : index
    %c0_134 = arith.constant 0 : index
    %c1_135 = arith.constant 1 : index
    %c6_136 = arith.constant 6 : index
    %c0_137 = arith.constant 0 : index
    %c0_138 = arith.constant 0 : index
    %127 = vector.load %arg3[%c0_133, %c0_134, %c1_135, %c6_136, %c0_137, %c0_138] : memref<1x1x3x25x8x128xf32, #tpu.memory_space<vmem>>, vector<1x1x1x1x8x128xf32>
    %128 = vector.shape_cast %127 : vector<1x1x1x1x8x128xf32> to vector<8x128xf32>
    %129 = arith.mulf %128, %122 : vector<8x128xf32>
    %130 = arith.addf %115, %129 : vector<8x128xf32>
    %c0_139 = arith.constant 0 : index
    %c0_140 = arith.constant 0 : index
    %c2_141 = arith.constant 2 : index
    %c6_142 = arith.constant 6 : index
    %c0_143 = arith.constant 0 : index
    %c0_144 = arith.constant 0 : index
    %131 = vector.load %arg3[%c0_139, %c0_140, %c2_141, %c6_142, %c0_143, %c0_144] : memref<1x1x3x25x8x128xf32, #tpu.memory_space<vmem>>, vector<1x1x1x1x8x128xf32>
    %132 = vector.shape_cast %131 : vector<1x1x1x1x8x128xf32> to vector<8x128xf32>
    %133 = arith.mulf %132, %122 : vector<8x128xf32>
    %134 = arith.addf %119, %133 : vector<8x128xf32>
    %135 = arith.mulf %14, %32 : vector<8x128xf32>
    %cst_145 = arith.constant 2.000000e+00 : f32
    %136 = vector.broadcast %cst_145 : f32 to vector<8x128xf32>
    %137 = arith.mulf %136, %135 : vector<8x128xf32>
    %c0_146 = arith.constant 0 : index
    %c0_147 = arith.constant 0 : index
    %c0_148 = arith.constant 0 : index
    %c7 = arith.constant 7 : index
    %c0_149 = arith.constant 0 : index
    %c0_150 = arith.constant 0 : index
    %138 = vector.load %arg3[%c0_146, %c0_147, %c0_148, %c7, %c0_149, %c0_150] : memref<1x1x3x25x8x128xf32, #tpu.memory_space<vmem>>, vector<1x1x1x1x8x128xf32>
    %139 = vector.shape_cast %138 : vector<1x1x1x1x8x128xf32> to vector<8x128xf32>
    %140 = arith.mulf %139, %137 : vector<8x128xf32>
    %141 = arith.addf %126, %140 : vector<8x128xf32>
    %c0_151 = arith.constant 0 : index
    %c0_152 = arith.constant 0 : index
    %c1_153 = arith.constant 1 : index
    %c7_154 = arith.constant 7 : index
    %c0_155 = arith.constant 0 : index
    %c0_156 = arith.constant 0 : index
    %142 = vector.load %arg3[%c0_151, %c0_152, %c1_153, %c7_154, %c0_155, %c0_156] : memref<1x1x3x25x8x128xf32, #tpu.memory_space<vmem>>, vector<1x1x1x1x8x128xf32>
    %143 = vector.shape_cast %142 : vector<1x1x1x1x8x128xf32> to vector<8x128xf32>
    %144 = arith.mulf %143, %137 : vector<8x128xf32>
    %145 = arith.addf %130, %144 : vector<8x128xf32>
    %c0_157 = arith.constant 0 : index
    %c0_158 = arith.constant 0 : index
    %c2_159 = arith.constant 2 : index
    %c7_160 = arith.constant 7 : index
    %c0_161 = arith.constant 0 : index
    %c0_162 = arith.constant 0 : index
    %146 = vector.load %arg3[%c0_157, %c0_158, %c2_159, %c7_160, %c0_161, %c0_162] : memref<1x1x3x25x8x128xf32, #tpu.memory_space<vmem>>, vector<1x1x1x1x8x128xf32>
    %147 = vector.shape_cast %146 : vector<1x1x1x1x8x128xf32> to vector<8x128xf32>
    %148 = arith.mulf %147, %137 : vector<8x128xf32>
    %149 = arith.addf %134, %148 : vector<8x128xf32>
    %150 = arith.mulf %14, %26 : vector<8x128xf32>
    %cst_163 = arith.constant 2.000000e+00 : f32
    %151 = vector.broadcast %cst_163 : f32 to vector<8x128xf32>
    %152 = arith.mulf %151, %150 : vector<8x128xf32>
    %c0_164 = arith.constant 0 : index
    %c0_165 = arith.constant 0 : index
    %c0_166 = arith.constant 0 : index
    %c8 = arith.constant 8 : index
    %c0_167 = arith.constant 0 : index
    %c0_168 = arith.constant 0 : index
    %153 = vector.load %arg3[%c0_164, %c0_165, %c0_166, %c8, %c0_167, %c0_168] : memref<1x1x3x25x8x128xf32, #tpu.memory_space<vmem>>, vector<1x1x1x1x8x128xf32>
    %154 = vector.shape_cast %153 : vector<1x1x1x1x8x128xf32> to vector<8x128xf32>
    %155 = arith.mulf %154, %152 : vector<8x128xf32>
    %156 = arith.addf %141, %155 : vector<8x128xf32>
    %c0_169 = arith.constant 0 : index
    %c0_170 = arith.constant 0 : index
    %c1_171 = arith.constant 1 : index
    %c8_172 = arith.constant 8 : index
    %c0_173 = arith.constant 0 : index
    %c0_174 = arith.constant 0 : index
    %157 = vector.load %arg3[%c0_169, %c0_170, %c1_171, %c8_172, %c0_173, %c0_174] : memref<1x1x3x25x8x128xf32, #tpu.memory_space<vmem>>, vector<1x1x1x1x8x128xf32>
    %158 = vector.shape_cast %157 : vector<1x1x1x1x8x128xf32> to vector<8x128xf32>
    %159 = arith.mulf %158, %152 : vector<8x128xf32>
    %160 = arith.addf %145, %159 : vector<8x128xf32>
    %c0_175 = arith.constant 0 : index
    %c0_176 = arith.constant 0 : index
    %c2_177 = arith.constant 2 : index
    %c8_178 = arith.constant 8 : index
    %c0_179 = arith.constant 0 : index
    %c0_180 = arith.constant 0 : index
    %161 = vector.load %arg3[%c0_175, %c0_176, %c2_177, %c8_178, %c0_179, %c0_180] : memref<1x1x3x25x8x128xf32, #tpu.memory_space<vmem>>, vector<1x1x1x1x8x128xf32>
    %162 = vector.shape_cast %161 : vector<1x1x1x1x8x128xf32> to vector<8x128xf32>
    %163 = arith.mulf %162, %152 : vector<8x128xf32>
    %164 = arith.addf %149, %163 : vector<8x128xf32>
    %cst_181 = arith.constant 1.41421354 : f32
    %165 = vector.broadcast %cst_181 : f32 to vector<8x128xf32>
    %166 = arith.mulf %165, %17 : vector<8x128xf32>
    %c0_182 = arith.constant 0 : index
    %c0_183 = arith.constant 0 : index
    %c0_184 = arith.constant 0 : index
    %c9 = arith.constant 9 : index
    %c0_185 = arith.constant 0 : index
    %c0_186 = arith.constant 0 : index
    %167 = vector.load %arg3[%c0_182, %c0_183, %c0_184, %c9, %c0_185, %c0_186] : memref<1x1x3x25x8x128xf32, #tpu.memory_space<vmem>>, vector<1x1x1x1x8x128xf32>
    %168 = vector.shape_cast %167 : vector<1x1x1x1x8x128xf32> to vector<8x128xf32>
    %169 = arith.mulf %168, %166 : vector<8x128xf32>
    %170 = arith.addf %156, %169 : vector<8x128xf32>
    %c0_187 = arith.constant 0 : index
    %c0_188 = arith.constant 0 : index
    %c1_189 = arith.constant 1 : index
    %c9_190 = arith.constant 9 : index
    %c0_191 = arith.constant 0 : index
    %c0_192 = arith.constant 0 : index
    %171 = vector.load %arg3[%c0_187, %c0_188, %c1_189, %c9_190, %c0_191, %c0_192] : memref<1x1x3x25x8x128xf32, #tpu.memory_space<vmem>>, vector<1x1x1x1x8x128xf32>
    %172 = vector.shape_cast %171 : vector<1x1x1x1x8x128xf32> to vector<8x128xf32>
    %173 = arith.mulf %172, %166 : vector<8x128xf32>
    %174 = arith.addf %160, %173 : vector<8x128xf32>
    %c0_193 = arith.constant 0 : index
    %c0_194 = arith.constant 0 : index
    %c2_195 = arith.constant 2 : index
    %c9_196 = arith.constant 9 : index
    %c0_197 = arith.constant 0 : index
    %c0_198 = arith.constant 0 : index
    %175 = vector.load %arg3[%c0_193, %c0_194, %c2_195, %c9_196, %c0_197, %c0_198] : memref<1x1x3x25x8x128xf32, #tpu.memory_space<vmem>>, vector<1x1x1x1x8x128xf32>
    %176 = vector.shape_cast %175 : vector<1x1x1x1x8x128xf32> to vector<8x128xf32>
    %177 = arith.mulf %176, %166 : vector<8x128xf32>
    %178 = arith.addf %164, %177 : vector<8x128xf32>
    %cst_199 = arith.constant 1.41421354 : f32
    %179 = vector.broadcast %cst_199 : f32 to vector<8x128xf32>
    %180 = arith.mulf %179, %23 : vector<8x128xf32>
    %c0_200 = arith.constant 0 : index
    %c0_201 = arith.constant 0 : index
    %c0_202 = arith.constant 0 : index
    %c10 = arith.constant 10 : index
    %c0_203 = arith.constant 0 : index
    %c0_204 = arith.constant 0 : index
    %181 = vector.load %arg3[%c0_200, %c0_201, %c0_202, %c10, %c0_203, %c0_204] : memref<1x1x3x25x8x128xf32, #tpu.memory_space<vmem>>, vector<1x1x1x1x8x128xf32>
    %182 = vector.shape_cast %181 : vector<1x1x1x1x8x128xf32> to vector<8x128xf32>
    %183 = arith.mulf %182, %180 : vector<8x128xf32>
    %184 = arith.addf %170, %183 : vector<8x128xf32>
    %c0_205 = arith.constant 0 : index
    %c0_206 = arith.constant 0 : index
    %c1_207 = arith.constant 1 : index
    %c10_208 = arith.constant 10 : index
    %c0_209 = arith.constant 0 : index
    %c0_210 = arith.constant 0 : index
    %185 = vector.load %arg3[%c0_205, %c0_206, %c1_207, %c10_208, %c0_209, %c0_210] : memref<1x1x3x25x8x128xf32, #tpu.memory_space<vmem>>, vector<1x1x1x1x8x128xf32>
    %186 = vector.shape_cast %185 : vector<1x1x1x1x8x128xf32> to vector<8x128xf32>
    %187 = arith.mulf %186, %180 : vector<8x128xf32>
    %188 = arith.addf %174, %187 : vector<8x128xf32>
    %c0_211 = arith.constant 0 : index
    %c0_212 = arith.constant 0 : index
    %c2_213 = arith.constant 2 : index
    %c10_214 = arith.constant 10 : index
    %c0_215 = arith.constant 0 : index
    %c0_216 = arith.constant 0 : index
    %189 = vector.load %arg3[%c0_211, %c0_212, %c2_213, %c10_214, %c0_215, %c0_216] : memref<1x1x3x25x8x128xf32, #tpu.memory_space<vmem>>, vector<1x1x1x1x8x128xf32>
    %190 = vector.shape_cast %189 : vector<1x1x1x1x8x128xf32> to vector<8x128xf32>
    %191 = arith.mulf %190, %180 : vector<8x128xf32>
    %192 = arith.addf %178, %191 : vector<8x128xf32>
    %cst_217 = arith.constant 1.41421354 : f32
    %193 = vector.broadcast %cst_217 : f32 to vector<8x128xf32>
    %194 = arith.mulf %193, %29 : vector<8x128xf32>
    %c0_218 = arith.constant 0 : index
    %c0_219 = arith.constant 0 : index
    %c0_220 = arith.constant 0 : index
    %c11 = arith.constant 11 : index
    %c0_221 = arith.constant 0 : index
    %c0_222 = arith.constant 0 : index
    %195 = vector.load %arg3[%c0_218, %c0_219, %c0_220, %c11, %c0_221, %c0_222] : memref<1x1x3x25x8x128xf32, #tpu.memory_space<vmem>>, vector<1x1x1x1x8x128xf32>
    %196 = vector.shape_cast %195 : vector<1x1x1x1x8x128xf32> to vector<8x128xf32>
    %197 = arith.mulf %196, %194 : vector<8x128xf32>
    %198 = arith.addf %184, %197 : vector<8x128xf32>
    %c0_223 = arith.constant 0 : index
    %c0_224 = arith.constant 0 : index
    %c1_225 = arith.constant 1 : index
    %c11_226 = arith.constant 11 : index
    %c0_227 = arith.constant 0 : index
    %c0_228 = arith.constant 0 : index
    %199 = vector.load %arg3[%c0_223, %c0_224, %c1_225, %c11_226, %c0_227, %c0_228] : memref<1x1x3x25x8x128xf32, #tpu.memory_space<vmem>>, vector<1x1x1x1x8x128xf32>
    %200 = vector.shape_cast %199 : vector<1x1x1x1x8x128xf32> to vector<8x128xf32>
    %201 = arith.mulf %200, %194 : vector<8x128xf32>
    %202 = arith.addf %188, %201 : vector<8x128xf32>
    %c0_229 = arith.constant 0 : index
    %c0_230 = arith.constant 0 : index
    %c2_231 = arith.constant 2 : index
    %c11_232 = arith.constant 11 : index
    %c0_233 = arith.constant 0 : index
    %c0_234 = arith.constant 0 : index
    %203 = vector.load %arg3[%c0_229, %c0_230, %c2_231, %c11_232, %c0_233, %c0_234] : memref<1x1x3x25x8x128xf32, #tpu.memory_space<vmem>>, vector<1x1x1x1x8x128xf32>
    %204 = vector.shape_cast %203 : vector<1x1x1x1x8x128xf32> to vector<8x128xf32>
    %205 = arith.mulf %204, %194 : vector<8x128xf32>
    %206 = arith.addf %192, %205 : vector<8x128xf32>
    %cst_235 = arith.constant 1.41421354 : f32
    %207 = vector.broadcast %cst_235 : f32 to vector<8x128xf32>
    %208 = arith.mulf %207, %35 : vector<8x128xf32>
    %c0_236 = arith.constant 0 : index
    %c0_237 = arith.constant 0 : index
    %c0_238 = arith.constant 0 : index
    %c12 = arith.constant 12 : index
    %c0_239 = arith.constant 0 : index
    %c0_240 = arith.constant 0 : index
    %209 = vector.load %arg3[%c0_236, %c0_237, %c0_238, %c12, %c0_239, %c0_240] : memref<1x1x3x25x8x128xf32, #tpu.memory_space<vmem>>, vector<1x1x1x1x8x128xf32>
    %210 = vector.shape_cast %209 : vector<1x1x1x1x8x128xf32> to vector<8x128xf32>
    %211 = arith.mulf %210, %208 : vector<8x128xf32>
    %212 = arith.addf %198, %211 : vector<8x128xf32>
    %c0_241 = arith.constant 0 : index
    %c0_242 = arith.constant 0 : index
    %c1_243 = arith.constant 1 : index
    %c12_244 = arith.constant 12 : index
    %c0_245 = arith.constant 0 : index
    %c0_246 = arith.constant 0 : index
    %213 = vector.load %arg3[%c0_241, %c0_242, %c1_243, %c12_244, %c0_245, %c0_246] : memref<1x1x3x25x8x128xf32, #tpu.memory_space<vmem>>, vector<1x1x1x1x8x128xf32>
    %214 = vector.shape_cast %213 : vector<1x1x1x1x8x128xf32> to vector<8x128xf32>
    %215 = arith.mulf %214, %208 : vector<8x128xf32>
    %216 = arith.addf %202, %215 : vector<8x128xf32>
    %c0_247 = arith.constant 0 : index
    %c0_248 = arith.constant 0 : index
    %c2_249 = arith.constant 2 : index
    %c12_250 = arith.constant 12 : index
    %c0_251 = arith.constant 0 : index
    %c0_252 = arith.constant 0 : index
    %217 = vector.load %arg3[%c0_247, %c0_248, %c2_249, %c12_250, %c0_251, %c0_252] : memref<1x1x3x25x8x128xf32, #tpu.memory_space<vmem>>, vector<1x1x1x1x8x128xf32>
    %218 = vector.shape_cast %217 : vector<1x1x1x1x8x128xf32> to vector<8x128xf32>
    %219 = arith.mulf %218, %208 : vector<8x128xf32>
    %220 = arith.addf %206, %219 : vector<8x128xf32>
    %221 = arith.mulf %23, %32 : vector<8x128xf32>
    %cst_253 = arith.constant 2.000000e+00 : f32
    %222 = vector.broadcast %cst_253 : f32 to vector<8x128xf32>
    %223 = arith.mulf %222, %221 : vector<8x128xf32>
    %c0_254 = arith.constant 0 : index
    %c0_255 = arith.constant 0 : index
    %c0_256 = arith.constant 0 : index
    %c13 = arith.constant 13 : index
    %c0_257 = arith.constant 0 : index
    %c0_258 = arith.constant 0 : index
    %224 = vector.load %arg3[%c0_254, %c0_255, %c0_256, %c13, %c0_257, %c0_258] : memref<1x1x3x25x8x128xf32, #tpu.memory_space<vmem>>, vector<1x1x1x1x8x128xf32>
    %225 = vector.shape_cast %224 : vector<1x1x1x1x8x128xf32> to vector<8x128xf32>
    %226 = arith.mulf %225, %223 : vector<8x128xf32>
    %227 = arith.addf %212, %226 : vector<8x128xf32>
    %c0_259 = arith.constant 0 : index
    %c0_260 = arith.constant 0 : index
    %c1_261 = arith.constant 1 : index
    %c13_262 = arith.constant 13 : index
    %c0_263 = arith.constant 0 : index
    %c0_264 = arith.constant 0 : index
    %228 = vector.load %arg3[%c0_259, %c0_260, %c1_261, %c13_262, %c0_263, %c0_264] : memref<1x1x3x25x8x128xf32, #tpu.memory_space<vmem>>, vector<1x1x1x1x8x128xf32>
    %229 = vector.shape_cast %228 : vector<1x1x1x1x8x128xf32> to vector<8x128xf32>
    %230 = arith.mulf %229, %223 : vector<8x128xf32>
    %231 = arith.addf %216, %230 : vector<8x128xf32>
    %c0_265 = arith.constant 0 : index
    %c0_266 = arith.constant 0 : index
    %c2_267 = arith.constant 2 : index
    %c13_268 = arith.constant 13 : index
    %c0_269 = arith.constant 0 : index
    %c0_270 = arith.constant 0 : index
    %232 = vector.load %arg3[%c0_265, %c0_266, %c2_267, %c13_268, %c0_269, %c0_270] : memref<1x1x3x25x8x128xf32, #tpu.memory_space<vmem>>, vector<1x1x1x1x8x128xf32>
    %233 = vector.shape_cast %232 : vector<1x1x1x1x8x128xf32> to vector<8x128xf32>
    %234 = arith.mulf %233, %223 : vector<8x128xf32>
    %235 = arith.addf %220, %234 : vector<8x128xf32>
    %236 = arith.mulf %20, %35 : vector<8x128xf32>
    %cst_271 = arith.constant 2.000000e+00 : f32
    %237 = vector.broadcast %cst_271 : f32 to vector<8x128xf32>
    %238 = arith.mulf %237, %236 : vector<8x128xf32>
    %c0_272 = arith.constant 0 : index
    %c0_273 = arith.constant 0 : index
    %c0_274 = arith.constant 0 : index
    %c14 = arith.constant 14 : index
    %c0_275 = arith.constant 0 : index
    %c0_276 = arith.constant 0 : index
    %239 = vector.load %arg3[%c0_272, %c0_273, %c0_274, %c14, %c0_275, %c0_276] : memref<1x1x3x25x8x128xf32, #tpu.memory_space<vmem>>, vector<1x1x1x1x8x128xf32>
    %240 = vector.shape_cast %239 : vector<1x1x1x1x8x128xf32> to vector<8x128xf32>
    %241 = arith.mulf %240, %238 : vector<8x128xf32>
    %242 = arith.addf %227, %241 : vector<8x128xf32>
    %c0_277 = arith.constant 0 : index
    %c0_278 = arith.constant 0 : index
    %c1_279 = arith.constant 1 : index
    %c14_280 = arith.constant 14 : index
    %c0_281 = arith.constant 0 : index
    %c0_282 = arith.constant 0 : index
    %243 = vector.load %arg3[%c0_277, %c0_278, %c1_279, %c14_280, %c0_281, %c0_282] : memref<1x1x3x25x8x128xf32, #tpu.memory_space<vmem>>, vector<1x1x1x1x8x128xf32>
    %244 = vector.shape_cast %243 : vector<1x1x1x1x8x128xf32> to vector<8x128xf32>
    %245 = arith.mulf %244, %238 : vector<8x128xf32>
    %246 = arith.addf %231, %245 : vector<8x128xf32>
    %c0_283 = arith.constant 0 : index
    %c0_284 = arith.constant 0 : index
    %c2_285 = arith.constant 2 : index
    %c14_286 = arith.constant 14 : index
    %c0_287 = arith.constant 0 : index
    %c0_288 = arith.constant 0 : index
    %247 = vector.load %arg3[%c0_283, %c0_284, %c2_285, %c14_286, %c0_287, %c0_288] : memref<1x1x3x25x8x128xf32, #tpu.memory_space<vmem>>, vector<1x1x1x1x8x128xf32>
    %248 = vector.shape_cast %247 : vector<1x1x1x1x8x128xf32> to vector<8x128xf32>
    %249 = arith.mulf %248, %238 : vector<8x128xf32>
    %250 = arith.addf %235, %249 : vector<8x128xf32>
    %251 = arith.mulf %23, %26 : vector<8x128xf32>
    %cst_289 = arith.constant 2.000000e+00 : f32
    %252 = vector.broadcast %cst_289 : f32 to vector<8x128xf32>
    %253 = arith.mulf %252, %251 : vector<8x128xf32>
    %c0_290 = arith.constant 0 : index
    %c0_291 = arith.constant 0 : index
    %c0_292 = arith.constant 0 : index
    %c15 = arith.constant 15 : index
    %c0_293 = arith.constant 0 : index
    %c0_294 = arith.constant 0 : index
    %254 = vector.load %arg3[%c0_290, %c0_291, %c0_292, %c15, %c0_293, %c0_294] : memref<1x1x3x25x8x128xf32, #tpu.memory_space<vmem>>, vector<1x1x1x1x8x128xf32>
    %255 = vector.shape_cast %254 : vector<1x1x1x1x8x128xf32> to vector<8x128xf32>
    %256 = arith.mulf %255, %253 : vector<8x128xf32>
    %257 = arith.addf %242, %256 : vector<8x128xf32>
    %c0_295 = arith.constant 0 : index
    %c0_296 = arith.constant 0 : index
    %c1_297 = arith.constant 1 : index
    %c15_298 = arith.constant 15 : index
    %c0_299 = arith.constant 0 : index
    %c0_300 = arith.constant 0 : index
    %258 = vector.load %arg3[%c0_295, %c0_296, %c1_297, %c15_298, %c0_299, %c0_300] : memref<1x1x3x25x8x128xf32, #tpu.memory_space<vmem>>, vector<1x1x1x1x8x128xf32>
    %259 = vector.shape_cast %258 : vector<1x1x1x1x8x128xf32> to vector<8x128xf32>
    %260 = arith.mulf %259, %253 : vector<8x128xf32>
    %261 = arith.addf %246, %260 : vector<8x128xf32>
    %c0_301 = arith.constant 0 : index
    %c0_302 = arith.constant 0 : index
    %c2_303 = arith.constant 2 : index
    %c15_304 = arith.constant 15 : index
    %c0_305 = arith.constant 0 : index
    %c0_306 = arith.constant 0 : index
    %262 = vector.load %arg3[%c0_301, %c0_302, %c2_303, %c15_304, %c0_305, %c0_306] : memref<1x1x3x25x8x128xf32, #tpu.memory_space<vmem>>, vector<1x1x1x1x8x128xf32>
    %263 = vector.shape_cast %262 : vector<1x1x1x1x8x128xf32> to vector<8x128xf32>
    %264 = arith.mulf %263, %253 : vector<8x128xf32>
    %265 = arith.addf %250, %264 : vector<8x128xf32>
    %266 = arith.mulf %20, %29 : vector<8x128xf32>
    %cst_307 = arith.constant 2.000000e+00 : f32
    %267 = vector.broadcast %cst_307 : f32 to vector<8x128xf32>
    %268 = arith.mulf %267, %266 : vector<8x128xf32>
    %c0_308 = arith.constant 0 : index
    %c0_309 = arith.constant 0 : index
    %c0_310 = arith.constant 0 : index
    %c16 = arith.constant 16 : index
    %c0_311 = arith.constant 0 : index
    %c0_312 = arith.constant 0 : index
    %269 = vector.load %arg3[%c0_308, %c0_309, %c0_310, %c16, %c0_311, %c0_312] : memref<1x1x3x25x8x128xf32, #tpu.memory_space<vmem>>, vector<1x1x1x1x8x128xf32>
    %270 = vector.shape_cast %269 : vector<1x1x1x1x8x128xf32> to vector<8x128xf32>
    %271 = arith.mulf %270, %268 : vector<8x128xf32>
    %272 = arith.addf %257, %271 : vector<8x128xf32>
    %c0_313 = arith.constant 0 : index
    %c0_314 = arith.constant 0 : index
    %c1_315 = arith.constant 1 : index
    %c16_316 = arith.constant 16 : index
    %c0_317 = arith.constant 0 : index
    %c0_318 = arith.constant 0 : index
    %273 = vector.load %arg3[%c0_313, %c0_314, %c1_315, %c16_316, %c0_317, %c0_318] : memref<1x1x3x25x8x128xf32, #tpu.memory_space<vmem>>, vector<1x1x1x1x8x128xf32>
    %274 = vector.shape_cast %273 : vector<1x1x1x1x8x128xf32> to vector<8x128xf32>
    %275 = arith.mulf %274, %268 : vector<8x128xf32>
    %276 = arith.addf %261, %275 : vector<8x128xf32>
    %c0_319 = arith.constant 0 : index
    %c0_320 = arith.constant 0 : index
    %c2_321 = arith.constant 2 : index
    %c16_322 = arith.constant 16 : index
    %c0_323 = arith.constant 0 : index
    %c0_324 = arith.constant 0 : index
    %277 = vector.load %arg3[%c0_319, %c0_320, %c2_321, %c16_322, %c0_323, %c0_324] : memref<1x1x3x25x8x128xf32, #tpu.memory_space<vmem>>, vector<1x1x1x1x8x128xf32>
    %278 = vector.shape_cast %277 : vector<1x1x1x1x8x128xf32> to vector<8x128xf32>
    %279 = arith.mulf %278, %268 : vector<8x128xf32>
    %280 = arith.addf %265, %279 : vector<8x128xf32>
    %281 = arith.mulf %17, %32 : vector<8x128xf32>
    %cst_325 = arith.constant 2.000000e+00 : f32
    %282 = vector.broadcast %cst_325 : f32 to vector<8x128xf32>
    %283 = arith.mulf %282, %281 : vector<8x128xf32>
    %c0_326 = arith.constant 0 : index
    %c0_327 = arith.constant 0 : index
    %c0_328 = arith.constant 0 : index
    %c17 = arith.constant 17 : index
    %c0_329 = arith.constant 0 : index
    %c0_330 = arith.constant 0 : index
    %284 = vector.load %arg3[%c0_326, %c0_327, %c0_328, %c17, %c0_329, %c0_330] : memref<1x1x3x25x8x128xf32, #tpu.memory_space<vmem>>, vector<1x1x1x1x8x128xf32>
    %285 = vector.shape_cast %284 : vector<1x1x1x1x8x128xf32> to vector<8x128xf32>
    %286 = arith.mulf %285, %283 : vector<8x128xf32>
    %287 = arith.addf %272, %286 : vector<8x128xf32>
    %c0_331 = arith.constant 0 : index
    %c0_332 = arith.constant 0 : index
    %c1_333 = arith.constant 1 : index
    %c17_334 = arith.constant 17 : index
    %c0_335 = arith.constant 0 : index
    %c0_336 = arith.constant 0 : index
    %288 = vector.load %arg3[%c0_331, %c0_332, %c1_333, %c17_334, %c0_335, %c0_336] : memref<1x1x3x25x8x128xf32, #tpu.memory_space<vmem>>, vector<1x1x1x1x8x128xf32>
    %289 = vector.shape_cast %288 : vector<1x1x1x1x8x128xf32> to vector<8x128xf32>
    %290 = arith.mulf %289, %283 : vector<8x128xf32>
    %291 = arith.addf %276, %290 : vector<8x128xf32>
    %c0_337 = arith.constant 0 : index
    %c0_338 = arith.constant 0 : index
    %c2_339 = arith.constant 2 : index
    %c17_340 = arith.constant 17 : index
    %c0_341 = arith.constant 0 : index
    %c0_342 = arith.constant 0 : index
    %292 = vector.load %arg3[%c0_337, %c0_338, %c2_339, %c17_340, %c0_341, %c0_342] : memref<1x1x3x25x8x128xf32, #tpu.memory_space<vmem>>, vector<1x1x1x1x8x128xf32>
    %293 = vector.shape_cast %292 : vector<1x1x1x1x8x128xf32> to vector<8x128xf32>
    %294 = arith.mulf %293, %283 : vector<8x128xf32>
    %295 = arith.addf %280, %294 : vector<8x128xf32>
    %296 = arith.mulf %14, %35 : vector<8x128xf32>
    %cst_343 = arith.constant 2.000000e+00 : f32
    %297 = vector.broadcast %cst_343 : f32 to vector<8x128xf32>
    %298 = arith.mulf %297, %296 : vector<8x128xf32>
    %c0_344 = arith.constant 0 : index
    %c0_345 = arith.constant 0 : index
    %c0_346 = arith.constant 0 : index
    %c18 = arith.constant 18 : index
    %c0_347 = arith.constant 0 : index
    %c0_348 = arith.constant 0 : index
    %299 = vector.load %arg3[%c0_344, %c0_345, %c0_346, %c18, %c0_347, %c0_348] : memref<1x1x3x25x8x128xf32, #tpu.memory_space<vmem>>, vector<1x1x1x1x8x128xf32>
    %300 = vector.shape_cast %299 : vector<1x1x1x1x8x128xf32> to vector<8x128xf32>
    %301 = arith.mulf %300, %298 : vector<8x128xf32>
    %302 = arith.addf %287, %301 : vector<8x128xf32>
    %c0_349 = arith.constant 0 : index
    %c0_350 = arith.constant 0 : index
    %c1_351 = arith.constant 1 : index
    %c18_352 = arith.constant 18 : index
    %c0_353 = arith.constant 0 : index
    %c0_354 = arith.constant 0 : index
    %303 = vector.load %arg3[%c0_349, %c0_350, %c1_351, %c18_352, %c0_353, %c0_354] : memref<1x1x3x25x8x128xf32, #tpu.memory_space<vmem>>, vector<1x1x1x1x8x128xf32>
    %304 = vector.shape_cast %303 : vector<1x1x1x1x8x128xf32> to vector<8x128xf32>
    %305 = arith.mulf %304, %298 : vector<8x128xf32>
    %306 = arith.addf %291, %305 : vector<8x128xf32>
    %c0_355 = arith.constant 0 : index
    %c0_356 = arith.constant 0 : index
    %c2_357 = arith.constant 2 : index
    %c18_358 = arith.constant 18 : index
    %c0_359 = arith.constant 0 : index
    %c0_360 = arith.constant 0 : index
    %307 = vector.load %arg3[%c0_355, %c0_356, %c2_357, %c18_358, %c0_359, %c0_360] : memref<1x1x3x25x8x128xf32, #tpu.memory_space<vmem>>, vector<1x1x1x1x8x128xf32>
    %308 = vector.shape_cast %307 : vector<1x1x1x1x8x128xf32> to vector<8x128xf32>
    %309 = arith.mulf %308, %298 : vector<8x128xf32>
    %310 = arith.addf %295, %309 : vector<8x128xf32>
    %311 = arith.mulf %17, %26 : vector<8x128xf32>
    %cst_361 = arith.constant 2.000000e+00 : f32
    %312 = vector.broadcast %cst_361 : f32 to vector<8x128xf32>
    %313 = arith.mulf %312, %311 : vector<8x128xf32>
    %c0_362 = arith.constant 0 : index
    %c0_363 = arith.constant 0 : index
    %c0_364 = arith.constant 0 : index
    %c19 = arith.constant 19 : index
    %c0_365 = arith.constant 0 : index
    %c0_366 = arith.constant 0 : index
    %314 = vector.load %arg3[%c0_362, %c0_363, %c0_364, %c19, %c0_365, %c0_366] : memref<1x1x3x25x8x128xf32, #tpu.memory_space<vmem>>, vector<1x1x1x1x8x128xf32>
    %315 = vector.shape_cast %314 : vector<1x1x1x1x8x128xf32> to vector<8x128xf32>
    %316 = arith.mulf %315, %313 : vector<8x128xf32>
    %317 = arith.addf %302, %316 : vector<8x128xf32>
    %c0_367 = arith.constant 0 : index
    %c0_368 = arith.constant 0 : index
    %c1_369 = arith.constant 1 : index
    %c19_370 = arith.constant 19 : index
    %c0_371 = arith.constant 0 : index
    %c0_372 = arith.constant 0 : index
    %318 = vector.load %arg3[%c0_367, %c0_368, %c1_369, %c19_370, %c0_371, %c0_372] : memref<1x1x3x25x8x128xf32, #tpu.memory_space<vmem>>, vector<1x1x1x1x8x128xf32>
    %319 = vector.shape_cast %318 : vector<1x1x1x1x8x128xf32> to vector<8x128xf32>
    %320 = arith.mulf %319, %313 : vector<8x128xf32>
    %321 = arith.addf %306, %320 : vector<8x128xf32>
    %c0_373 = arith.constant 0 : index
    %c0_374 = arith.constant 0 : index
    %c2_375 = arith.constant 2 : index
    %c19_376 = arith.constant 19 : index
    %c0_377 = arith.constant 0 : index
    %c0_378 = arith.constant 0 : index
    %322 = vector.load %arg3[%c0_373, %c0_374, %c2_375, %c19_376, %c0_377, %c0_378] : memref<1x1x3x25x8x128xf32, #tpu.memory_space<vmem>>, vector<1x1x1x1x8x128xf32>
    %323 = vector.shape_cast %322 : vector<1x1x1x1x8x128xf32> to vector<8x128xf32>
    %324 = arith.mulf %323, %313 : vector<8x128xf32>
    %325 = arith.addf %310, %324 : vector<8x128xf32>
    %326 = arith.mulf %14, %29 : vector<8x128xf32>
    %cst_379 = arith.constant 2.000000e+00 : f32
    %327 = vector.broadcast %cst_379 : f32 to vector<8x128xf32>
    %328 = arith.mulf %327, %326 : vector<8x128xf32>
    %c0_380 = arith.constant 0 : index
    %c0_381 = arith.constant 0 : index
    %c0_382 = arith.constant 0 : index
    %c20 = arith.constant 20 : index
    %c0_383 = arith.constant 0 : index
    %c0_384 = arith.constant 0 : index
    %329 = vector.load %arg3[%c0_380, %c0_381, %c0_382, %c20, %c0_383, %c0_384] : memref<1x1x3x25x8x128xf32, #tpu.memory_space<vmem>>, vector<1x1x1x1x8x128xf32>
    %330 = vector.shape_cast %329 : vector<1x1x1x1x8x128xf32> to vector<8x128xf32>
    %331 = arith.mulf %330, %328 : vector<8x128xf32>
    %332 = arith.addf %317, %331 : vector<8x128xf32>
    %c0_385 = arith.constant 0 : index
    %c0_386 = arith.constant 0 : index
    %c1_387 = arith.constant 1 : index
    %c20_388 = arith.constant 20 : index
    %c0_389 = arith.constant 0 : index
    %c0_390 = arith.constant 0 : index
    %333 = vector.load %arg3[%c0_385, %c0_386, %c1_387, %c20_388, %c0_389, %c0_390] : memref<1x1x3x25x8x128xf32, #tpu.memory_space<vmem>>, vector<1x1x1x1x8x128xf32>
    %334 = vector.shape_cast %333 : vector<1x1x1x1x8x128xf32> to vector<8x128xf32>
    %335 = arith.mulf %334, %328 : vector<8x128xf32>
    %336 = arith.addf %321, %335 : vector<8x128xf32>
    %c0_391 = arith.constant 0 : index
    %c0_392 = arith.constant 0 : index
    %c2_393 = arith.constant 2 : index
    %c20_394 = arith.constant 20 : index
    %c0_395 = arith.constant 0 : index
    %c0_396 = arith.constant 0 : index
    %337 = vector.load %arg3[%c0_391, %c0_392, %c2_393, %c20_394, %c0_395, %c0_396] : memref<1x1x3x25x8x128xf32, #tpu.memory_space<vmem>>, vector<1x1x1x1x8x128xf32>
    %338 = vector.shape_cast %337 : vector<1x1x1x1x8x128xf32> to vector<8x128xf32>
    %339 = arith.mulf %338, %328 : vector<8x128xf32>
    %340 = arith.addf %325, %339 : vector<8x128xf32>
    %341 = arith.mulf %23, %35 : vector<8x128xf32>
    %cst_397 = arith.constant 2.000000e+00 : f32
    %342 = vector.broadcast %cst_397 : f32 to vector<8x128xf32>
    %343 = arith.mulf %342, %341 : vector<8x128xf32>
    %c0_398 = arith.constant 0 : index
    %c0_399 = arith.constant 0 : index
    %c0_400 = arith.constant 0 : index
    %c21 = arith.constant 21 : index
    %c0_401 = arith.constant 0 : index
    %c0_402 = arith.constant 0 : index
    %344 = vector.load %arg3[%c0_398, %c0_399, %c0_400, %c21, %c0_401, %c0_402] : memref<1x1x3x25x8x128xf32, #tpu.memory_space<vmem>>, vector<1x1x1x1x8x128xf32>
    %345 = vector.shape_cast %344 : vector<1x1x1x1x8x128xf32> to vector<8x128xf32>
    %346 = arith.mulf %345, %343 : vector<8x128xf32>
    %347 = arith.addf %332, %346 : vector<8x128xf32>
    %c0_403 = arith.constant 0 : index
    %c0_404 = arith.constant 0 : index
    %c1_405 = arith.constant 1 : index
    %c21_406 = arith.constant 21 : index
    %c0_407 = arith.constant 0 : index
    %c0_408 = arith.constant 0 : index
    %348 = vector.load %arg3[%c0_403, %c0_404, %c1_405, %c21_406, %c0_407, %c0_408] : memref<1x1x3x25x8x128xf32, #tpu.memory_space<vmem>>, vector<1x1x1x1x8x128xf32>
    %349 = vector.shape_cast %348 : vector<1x1x1x1x8x128xf32> to vector<8x128xf32>
    %350 = arith.mulf %349, %343 : vector<8x128xf32>
    %351 = arith.addf %336, %350 : vector<8x128xf32>
    %c0_409 = arith.constant 0 : index
    %c0_410 = arith.constant 0 : index
    %c2_411 = arith.constant 2 : index
    %c21_412 = arith.constant 21 : index
    %c0_413 = arith.constant 0 : index
    %c0_414 = arith.constant 0 : index
    %352 = vector.load %arg3[%c0_409, %c0_410, %c2_411, %c21_412, %c0_413, %c0_414] : memref<1x1x3x25x8x128xf32, #tpu.memory_space<vmem>>, vector<1x1x1x1x8x128xf32>
    %353 = vector.shape_cast %352 : vector<1x1x1x1x8x128xf32> to vector<8x128xf32>
    %354 = arith.mulf %353, %343 : vector<8x128xf32>
    %355 = arith.addf %340, %354 : vector<8x128xf32>
    %356 = arith.mulf %23, %29 : vector<8x128xf32>
    %cst_415 = arith.constant 2.000000e+00 : f32
    %357 = vector.broadcast %cst_415 : f32 to vector<8x128xf32>
    %358 = arith.mulf %357, %356 : vector<8x128xf32>
    %c0_416 = arith.constant 0 : index
    %c0_417 = arith.constant 0 : index
    %c0_418 = arith.constant 0 : index
    %c22 = arith.constant 22 : index
    %c0_419 = arith.constant 0 : index
    %c0_420 = arith.constant 0 : index
    %359 = vector.load %arg3[%c0_416, %c0_417, %c0_418, %c22, %c0_419, %c0_420] : memref<1x1x3x25x8x128xf32, #tpu.memory_space<vmem>>, vector<1x1x1x1x8x128xf32>
    %360 = vector.shape_cast %359 : vector<1x1x1x1x8x128xf32> to vector<8x128xf32>
    %361 = arith.mulf %360, %358 : vector<8x128xf32>
    %362 = arith.addf %347, %361 : vector<8x128xf32>
    %c0_421 = arith.constant 0 : index
    %c0_422 = arith.constant 0 : index
    %c1_423 = arith.constant 1 : index
    %c22_424 = arith.constant 22 : index
    %c0_425 = arith.constant 0 : index
    %c0_426 = arith.constant 0 : index
    %363 = vector.load %arg3[%c0_421, %c0_422, %c1_423, %c22_424, %c0_425, %c0_426] : memref<1x1x3x25x8x128xf32, #tpu.memory_space<vmem>>, vector<1x1x1x1x8x128xf32>
    %364 = vector.shape_cast %363 : vector<1x1x1x1x8x128xf32> to vector<8x128xf32>
    %365 = arith.mulf %364, %358 : vector<8x128xf32>
    %366 = arith.addf %351, %365 : vector<8x128xf32>
    %c0_427 = arith.constant 0 : index
    %c0_428 = arith.constant 0 : index
    %c2_429 = arith.constant 2 : index
    %c22_430 = arith.constant 22 : index
    %c0_431 = arith.constant 0 : index
    %c0_432 = arith.constant 0 : index
    %367 = vector.load %arg3[%c0_427, %c0_428, %c2_429, %c22_430, %c0_431, %c0_432] : memref<1x1x3x25x8x128xf32, #tpu.memory_space<vmem>>, vector<1x1x1x1x8x128xf32>
    %368 = vector.shape_cast %367 : vector<1x1x1x1x8x128xf32> to vector<8x128xf32>
    %369 = arith.mulf %368, %358 : vector<8x128xf32>
    %370 = arith.addf %355, %369 : vector<8x128xf32>
    %371 = arith.mulf %17, %35 : vector<8x128xf32>
    %cst_433 = arith.constant 2.000000e+00 : f32
    %372 = vector.broadcast %cst_433 : f32 to vector<8x128xf32>
    %373 = arith.mulf %372, %371 : vector<8x128xf32>
    %c0_434 = arith.constant 0 : index
    %c0_435 = arith.constant 0 : index
    %c0_436 = arith.constant 0 : index
    %c23 = arith.constant 23 : index
    %c0_437 = arith.constant 0 : index
    %c0_438 = arith.constant 0 : index
    %374 = vector.load %arg3[%c0_434, %c0_435, %c0_436, %c23, %c0_437, %c0_438] : memref<1x1x3x25x8x128xf32, #tpu.memory_space<vmem>>, vector<1x1x1x1x8x128xf32>
    %375 = vector.shape_cast %374 : vector<1x1x1x1x8x128xf32> to vector<8x128xf32>
    %376 = arith.mulf %375, %373 : vector<8x128xf32>
    %377 = arith.addf %362, %376 : vector<8x128xf32>
    %c0_439 = arith.constant 0 : index
    %c0_440 = arith.constant 0 : index
    %c1_441 = arith.constant 1 : index
    %c23_442 = arith.constant 23 : index
    %c0_443 = arith.constant 0 : index
    %c0_444 = arith.constant 0 : index
    %378 = vector.load %arg3[%c0_439, %c0_440, %c1_441, %c23_442, %c0_443, %c0_444] : memref<1x1x3x25x8x128xf32, #tpu.memory_space<vmem>>, vector<1x1x1x1x8x128xf32>
    %379 = vector.shape_cast %378 : vector<1x1x1x1x8x128xf32> to vector<8x128xf32>
    %380 = arith.mulf %379, %373 : vector<8x128xf32>
    %381 = arith.addf %366, %380 : vector<8x128xf32>
    %c0_445 = arith.constant 0 : index
    %c0_446 = arith.constant 0 : index
    %c2_447 = arith.constant 2 : index
    %c23_448 = arith.constant 23 : index
    %c0_449 = arith.constant 0 : index
    %c0_450 = arith.constant 0 : index
    %382 = vector.load %arg3[%c0_445, %c0_446, %c2_447, %c23_448, %c0_449, %c0_450] : memref<1x1x3x25x8x128xf32, #tpu.memory_space<vmem>>, vector<1x1x1x1x8x128xf32>
    %383 = vector.shape_cast %382 : vector<1x1x1x1x8x128xf32> to vector<8x128xf32>
    %384 = arith.mulf %383, %373 : vector<8x128xf32>
    %385 = arith.addf %370, %384 : vector<8x128xf32>
    %386 = arith.mulf %17, %29 : vector<8x128xf32>
    %cst_451 = arith.constant 2.000000e+00 : f32
    %387 = vector.broadcast %cst_451 : f32 to vector<8x128xf32>
    %388 = arith.mulf %387, %386 : vector<8x128xf32>
    %c0_452 = arith.constant 0 : index
    %c0_453 = arith.constant 0 : index
    %c0_454 = arith.constant 0 : index
    %c24 = arith.constant 24 : index
    %c0_455 = arith.constant 0 : index
    %c0_456 = arith.constant 0 : index
    %389 = vector.load %arg3[%c0_452, %c0_453, %c0_454, %c24, %c0_455, %c0_456] : memref<1x1x3x25x8x128xf32, #tpu.memory_space<vmem>>, vector<1x1x1x1x8x128xf32>
    %390 = vector.shape_cast %389 : vector<1x1x1x1x8x128xf32> to vector<8x128xf32>
    %391 = arith.mulf %390, %388 : vector<8x128xf32>
    %392 = arith.addf %377, %391 : vector<8x128xf32>
    %c0_457 = arith.constant 0 : index
    %c0_458 = arith.constant 0 : index
    %c1_459 = arith.constant 1 : index
    %c24_460 = arith.constant 24 : index
    %c0_461 = arith.constant 0 : index
    %c0_462 = arith.constant 0 : index
    %393 = vector.load %arg3[%c0_457, %c0_458, %c1_459, %c24_460, %c0_461, %c0_462] : memref<1x1x3x25x8x128xf32, #tpu.memory_space<vmem>>, vector<1x1x1x1x8x128xf32>
    %394 = vector.shape_cast %393 : vector<1x1x1x1x8x128xf32> to vector<8x128xf32>
    %395 = arith.mulf %394, %388 : vector<8x128xf32>
    %396 = arith.addf %381, %395 : vector<8x128xf32>
    %c0_463 = arith.constant 0 : index
    %c0_464 = arith.constant 0 : index
    %c2_465 = arith.constant 2 : index
    %c24_466 = arith.constant 24 : index
    %c0_467 = arith.constant 0 : index
    %c0_468 = arith.constant 0 : index
    %397 = vector.load %arg3[%c0_463, %c0_464, %c2_465, %c24_466, %c0_467, %c0_468] : memref<1x1x3x25x8x128xf32, #tpu.memory_space<vmem>>, vector<1x1x1x1x8x128xf32>
    %398 = vector.shape_cast %397 : vector<1x1x1x1x8x128xf32> to vector<8x128xf32>
    %399 = arith.mulf %398, %388 : vector<8x128xf32>
    %400 = arith.addf %385, %399 : vector<8x128xf32>
    %c0_469 = arith.constant 0 : index
    %c0_470 = arith.constant 0 : index
    %c0_471 = arith.constant 0 : index
    %401 = vector.load %arg5[%c0_469, %c0_470, %c0_471] : memref<1x8x128xf32, #tpu.memory_space<vmem>>, vector<1x8x128xf32>
    %402 = vector.shape_cast %401 : vector<1x8x128xf32> to vector<8x128xf32>
    %c0_472 = arith.constant 0 : index
    %c0_473 = arith.constant 0 : index
    %c0_474 = arith.constant 0 : index
    %c0_475 = arith.constant 0 : index
    %403 = vector.load %arg6[%c0_472, %c0_473, %c0_474, %c0_475] : memref<1x3x8x128xf32, #tpu.memory_space<vmem>>, vector<1x1x8x128xf32>
    %404 = vector.shape_cast %403 : vector<1x1x8x128xf32> to vector<8x128xf32>
    %405 = arith.mulf %392, %402 : vector<8x128xf32>
    %406 = arith.addf %404, %405 : vector<8x128xf32>
    %c0_476 = arith.constant 0 : index
    %c0_477 = arith.constant 0 : index
    %c0_478 = arith.constant 0 : index
    %c0_479 = arith.constant 0 : index
    %407 = vector.load %arg6[%c0_476, %c0_477, %c0_478, %c0_479] : memref<1x3x8x128xf32, #tpu.memory_space<vmem>>, vector<1x1x8x128xf32>
    %408 = vector.shape_cast %407 : vector<1x1x8x128xf32> to vector<8x128xf32>
    %409 = vector.shape_cast %406 : vector<8x128xf32> to vector<1x1x8x128xf32>
    tpu.vector_store %arg6[%c0_476, %c0_477, %c0_478, %c0_479], %409 {strides = array<i32>} : memref<1x3x8x128xf32, #tpu.memory_space<vmem>>, vector<1x1x8x128xf32>,
    %c0_480 = arith.constant 0 : index
    %c1_481 = arith.constant 1 : index
    %c0_482 = arith.constant 0 : index
    %c0_483 = arith.constant 0 : index
    %410 = vector.load %arg6[%c0_480, %c1_481, %c0_482, %c0_483] : memref<1x3x8x128xf32, #tpu.memory_space<vmem>>, vector<1x1x8x128xf32>
    %411 = vector.shape_cast %410 : vector<1x1x8x128xf32> to vector<8x128xf32>
    %412 = arith.mulf %396, %402 : vector<8x128xf32>
    %413 = arith.addf %411, %412 : vector<8x128xf32>
    %c0_484 = arith.constant 0 : index
    %c1_485 = arith.constant 1 : index
    %c0_486 = arith.constant 0 : index
    %c0_487 = arith.constant 0 : index
    %414 = vector.load %arg6[%c0_484, %c1_485, %c0_486, %c0_487] : memref<1x3x8x128xf32, #tpu.memory_space<vmem>>, vector<1x1x8x128xf32>
    %415 = vector.shape_cast %414 : vector<1x1x8x128xf32> to vector<8x128xf32>
    %416 = vector.shape_cast %413 : vector<8x128xf32> to vector<1x1x8x128xf32>
    tpu.vector_store %arg6[%c0_484, %c1_485, %c0_486, %c0_487], %416 {strides = array<i32>} : memref<1x3x8x128xf32, #tpu.memory_space<vmem>>, vector<1x1x8x128xf32>,
    %c0_488 = arith.constant 0 : index
    %c2_489 = arith.constant 2 : index
    %c0_490 = arith.constant 0 : index
    %c0_491 = arith.constant 0 : index
    %417 = vector.load %arg6[%c0_488, %c2_489, %c0_490, %c0_491] : memref<1x3x8x128xf32, #tpu.memory_space<vmem>>, vector<1x1x8x128xf32>
    %418 = vector.shape_cast %417 : vector<1x1x8x128xf32> to vector<8x128xf32>
    %419 = arith.mulf %400, %402 : vector<8x128xf32>
    %420 = arith.addf %418, %419 : vector<8x128xf32>
    %c0_492 = arith.constant 0 : index
    %c2_493 = arith.constant 2 : index
    %c0_494 = arith.constant 0 : index
    %c0_495 = arith.constant 0 : index
    %421 = vector.load %arg6[%c0_492, %c2_493, %c0_494, %c0_495] : memref<1x3x8x128xf32, #tpu.memory_space<vmem>>, vector<1x1x8x128xf32>
    %422 = vector.shape_cast %421 : vector<1x1x8x128xf32> to vector<8x128xf32>
    %423 = vector.shape_cast %420 : vector<8x128xf32> to vector<1x1x8x128xf32>
    tpu.vector_store %arg6[%c0_492, %c2_493, %c0_494, %c0_495], %423 {strides = array<i32>} : memref<1x3x8x128xf32, #tpu.memory_space<vmem>>, vector<1x1x8x128xf32>,
    return
  }
  func.func @transform_0(%arg0: i32, %arg1: i32, %arg2: i32) -> (i32, i32, i32, i32, i32, i32) {
    %c0_i32 = arith.constant 0 : i32
    %c0_i32_0 = arith.constant 0 : i32
    %c0_i32_1 = arith.constant 0 : i32
    %c0_i32_2 = arith.constant 0 : i32
    return %arg2, %arg0, %c0_i32, %c0_i32_0, %arg1, %c0_i32_1 : i32, i32, i32, i32, i32, i32
  }
  func.func @transform_1(%arg0: i32, %arg1: i32, %arg2: i32) -> (i32, i32, i32, i32) {
    %c0_i32 = arith.constant 0 : i32
    %c0_i32_0 = arith.constant 0 : i32
    %c0_i32_1 = arith.constant 0 : i32
    return %arg2, %c0_i32, %arg1, %c0_i32_0 : i32, i32, i32, i32
  }
  func.func @transform_2(%arg0: i32, %arg1: i32, %arg2: i32) -> (i32, i32, i32) {
    %c0_i32 = arith.constant 0 : i32
    %c0_i32_0 = arith.constant 0 : i32
    return %arg2, %arg1, %c0_i32 : i32, i32, i32
  }
  func.func @transform_3(%arg0: i32, %arg1: i32, %arg2: i32) -> (i32, i32, i32, i32) {
    %c0_i32 = arith.constant 0 : i32
    %c0_i32_0 = arith.constant 0 : i32
    %c0_i32_1 = arith.constant 0 : i32
    return %arg0, %c0_i32, %arg1, %c0_i32_0 : i32, i32, i32, i32
  }
}

</mosaic_0001>

<bundles_post_ra>
// kernel: tpu_custom_call.1
= control target key start
LH: loop header
LB: loop body
LE: loop exit
PB: predicated region body
PF: predicated region fallthrough
CT: control target
= control target key end

     0   :  { %s3570_s0 = inlined_call_operand.hbm [shape: f32[4,2,3,25,8,128], index: 0, kind: input, shape index: {}]   ;;  %s3571_s1 = inlined_call_operand.hbm [shape: f32[4,2,8,128], index: 1, kind: input, shape index: {}]   ;;  %s3572_s2 = inlined_call_operand.hbm [shape: f32[4,8,128], index: 2, kind: input, shape index: {}]   ;;  %s3573_s3 = inlined_call_operand.hbm [shape: f32[2,3,8,128], index: 3, kind: output, shape index: {}]  }
   0x1   :  { %3593 = sst [smem:[#allocation27_spill]] %s3571_s1 }
   0x2   :  { %3594 = sst [smem:[#allocation28_spill]] %s3573_s3 }
   0x3   :  { %8 = vsyncpa [#allocation3], 0 }
   0x4   :  { %10 = vsyncpa [#allocation3 + $0x1], 0 }
   0x5   :  { %11 = vsyncpa [#allocation6], 0 }
   0x6   :  { %13 = vsyncpa [#allocation6 + $0x1], 0 }
   0x7   :  { %14 = vsyncpa [#allocation4], 0 }
   0x8   :  { %16 = vsyncpa [#allocation4 + $0x1], 0  ;;  %s2609_s12 = smov 0   ;;  %s2611_s13 = smov 0  }
   0x9   :  { %s2613_s14 = smov 0   ;;  %s2615_s15 = smov 0  }
   0xa   :  { %s2617_s16 = smov 0   ;;  %s2619_s17 = smov 0  }
   0xb   :  { %s2621_s18 = smov 0   ;;  %s2623_s19 = smov 0  }
   0xc   :  { %s2625_s20 = smov 0   ;;  %s2627_s21 = smov 0  }
   0xd   :  { %s2629_s22 = smov 0   ;;  %s2631_s23 = smov 0  }
   0xe   :  { %s2633_s24 = smov 0   ;;  %s2635_s25 = smov 0  }
   0xf LB: > { %3595 = sst [smem:[#allocation12_spill]] %s2523_s12  ;;  %s2678_s26 = sadd.s32 4294967295, %s2575_s25   ;;  %s2575_s25 = sphi %s2635_s25, %s22_s25   ;;  %s2571_s24 = sphi %s2633_s24, %s3650_s24   ;;  %s2567_s23 = sphi %s2631_s23, %s3657_s23   ;;  %s2563_s22 = sphi %s2629_s22, %s3648_s22   ;;  %s2559_s21 = sphi %s2627_s21, %s3656_s21   ;;  %s2555_s20 = sphi %s2625_s20, %s3647_s20   ;;  %s2551_s19 = sphi %s2623_s19, %s3655_s19   ;;  %s2547_s18 = sphi %s2621_s18, %s3654_s18   ;;  %s2543_s17 = sphi %s2619_s17, %s3653_s17   ;;  %s2539_s16 = sphi %s2617_s16, %s3652_s16   ;;  %s2535_s15 = sphi %s2615_s15, %s3651_s15   ;;  %s2531_s14 = sphi %s2613_s14, %s3644_s14   ;;  %s2527_s13 = sphi %s2611_s13, %s3643_s13   ;;  %s2523_s12 = sphi %s2609_s12, %s3642_s12  }
  0x10   : > { %3596 = sst [smem:[#allocation13_spill]] %s2527_s13  ;;  %s34_s27 = sadd.s32 1, %s2567_s23 }
  0x11   : > { %3597 = sst [smem:[#allocation14_spill]] %s2531_s14  ;;  %p2681_p0 = scmp.ge.s32.totalorder %s34_s27, 4 }
  0x12   : > { %3598 = sst [smem:[#allocation15_spill]] %s2555_s20  ;;  %p60_p1 = scmp.eq.s32.totalorder %s2575_s25, 0 }
  0x13   : > { %3599 = sst [smem:[#allocation16_spill]] %s2559_s21  ;;  %p66_p2 = scmp.eq.s32.totalorder %s2678_s26, 0 }
  0x14   : > { %3600 = sst [smem:[#allocation17_spill]] %s2563_s22  ;;  %s80_s29 = sadd.s32 1, %s2543_s17 }
  0x15   : > { %3601 = sst [smem:[#allocation18_spill]] %s2571_s24  ;;  %s3659_s27 = smov (%p2681_p0, %s34_s27), 0 }
  0x16   : > { %3602 = sst [smem:[#allocation19_spill]] %s2575_s25  ;;  %p87_p3 = scmp.ne.s32.totalorder %s2543_s17, %s2539_s16 }
  0x17   : > { %3604 = sst [smem:[#allocation20_spill]] %s3659_s27  ;;  %p93_p4 = scmp.ne.s32.totalorder %s2539_s16, %s2535_s15 }
  0x18   : > { %s2697_s30 = ssub.s32 %s2567_s23, %s3659_s27  ;;  %p147_p5 = scmp.eq.s32.totalorder %s2678_s26, 7 }
  0x19   : > { %p78_p6 = scmp.eq.s32.totalorder %s2697_s30, 0  ;;  %p2703_p7 = por %p87_p3, %p60_p1 }
  0x1a   : > { %p2709_p8 = por %p93_p4, %p66_p2  ;;  %p3577_p9 = scmp.lt.s32.totalorder %s2575_s25, 8 }
  0x1b   : > { %s2714_s6 = scalar_select %p78_p6, %s2543_s17, %s80_s29  }
  0x1c   : > { %s3606_s5 = scalar_select %p2709_p8, 1, 0 }
  0x1d   : > { %3607 = sst [smem:[#allocation21_spill]] %s2714_s6  ;;  %s198_s7 = sand.u32 1, %s2575_s25  }
  0x1e   : > { %s3576_s8 = sand.u32 1, %s2543_s17   ;;  %s2180_s10 = sshll.u32 %s2567_s23, 4 }
  0x1f   : > { %s2065_s9 = sshll.u32 %s3576_s8, 4  ;;  %s3608_s1 = sld [smem:[#allocation27_spill]] }
  0x20   : > { %s202_s22 = scalar_lea.vmem [#allocation5], %s2065_s9  ;;  %p2729_p10 = pnand %p3577_p9, %p2703_p7 }
  0x21   : > { %s211_s29 = sshll.u32 %s202_s22, 4  ;;  %p2070_p11 = scmp.ge.s32.totalorder %s2575_s25, 1  ;;  %s212_s29 = int_to_ptr.vmem [resolvable:$true] %s211_s29 }
  0x22   : > { %p239_p12 = scmp.lt.s32.totalorder %s2575_s25, 9  ;;  %s3579_s22 = smov 128  }
  0x23   : > { %s3580_s4 = smov 8   ;;  %s52_s11 = sadd.s32 1, %s2555_s20 }
  0x24   : > { %p2743_p13 = pnand %p2070_p11, %p239_p12  ;;  %p59_p3 = scmp.ne.s32.totalorder %s2555_s20, %s2551_s19 }
  0x25   : > { %s208_s27 = scalar_lea.hbm %s3608_s1, %s2180_s10  ;;  %s41_s10 = sadd.s32 1, %s2571_s24 }
  0x26   : > { %s209_s3 = sshll.u32 %s208_s27, 4  ;;  %s2735_s27 = scalar_lea.sflag [#allocation6], %s198_s7  ;;  %s210_s3 = int_to_ptr.hbm [resolvable:$true] %s209_s3 }
  0x27   : > { %2201 = dma.hbm_to_vmem [thread:$0]  (!%p2729_p10), %s210_s3, 256, %s212_s29, %s2735_s27, %s3579_s22, %s3579_s22, %s3580_s4  }
  0x28   : > { %s2061_s7 = sadd.s32 4294967294, %s2575_s25   ;;  %s3661_s10 = smov (!%p2681_p0, %s41_s10), %s2571_s24 }
  0x29   : > { %p65_p4 = scmp.ne.s32.totalorder %s2551_s19, %s2547_s18  ;;  %p43_p6 = scmp.ge.s32.totalorder %s3661_s10, 2 }
  0x2a   : > { %s136_s15 = sadd.s32 1, %s2531_s14  ;;  %p2760_p7 = por %p60_p1, %p59_p3 }
  0x2b   : > { %p2766_p11 = por %p66_p2, %p65_p4  ;;  %s3663_s10 = smov (%p43_p6, %s3661_s10), 0 }
  0x2c   : > { %3613 = sst [smem:[#allocation22_spill]] %s3663_s10  ;;  %p146_p0 = scmp.ne.s32.totalorder %s2531_s14, %s2527_s13 }
  0x2d   : > { %p152_p12 = scmp.ne.s32.totalorder %s2527_s13, %s2523_s12  ;;  %s46_s18 = ssub.s32 %s2571_s24, %s3663_s10 }
  0x2e   : > { %p153_p9 = scmp.eq.s32.totalorder %s2061_s7, 7  ;;  %s47_s28 = sor.u32 %s46_s18, %s2697_s30 }
  0x2f   : > { %p134_p1 = scmp.eq.s32.totalorder %s46_s18, 0  ;;  %p50_p3 = scmp.eq.s32.totalorder %s47_s28, 0 }
  0x30   : > { %p2781_p8 = por %p147_p5, %p146_p0  ;;  %p2791_p2 = por %p153_p9, %p152_p12 }
  0x31   : > { %s2786_s4 = scalar_select %p134_p1, %s2531_s14, %s136_s15  }
  0x32   : > { %s3614_s22 = scalar_select %p2781_p8, 1, 0 }
  0x33   : > { %3616 = sst [smem:[#allocation24_spill]] %s2786_s4  ;;  %s173_s10 = sand.u32 1, %s2555_s20  }
  0x34   : > { %3615 = sst [smem:[#allocation23_spill]] %s3614_s22  ;;  %s2181_s7 = smul.u32 600, %s173_s10 }
  0x35   : > { %s2789_s1 = scalar_select %p50_p3, %s2555_s20, %s52_s11  }
  0x36   : > { %s3618_s6 = scalar_select %p2791_p2, 1, 0 }
  0x37   : > { %3617 = sst [smem:[#allocation25_spill]] %s2789_s1  ;;  %s2182_s30 = smul.u32 75, %s2571_s24 }
  0x38   : > { %3619 = sst [smem:[#allocation26_spill]] %s3618_s6  ;;  %p3620_p4 = scmp.lt.s32.totalorder %s2575_s25, 8 }
  0x39   : > { %s2183_s28 = smul.u32 150, %s2567_s23  ;;  %s177_s15 = scalar_lea.vmem [#allocation2], %s2181_s7 }
  0x3a   : > { %p2801_p6 = pnand %p3620_p4, %p2760_p7  ;;  %s188_s4 = sshll.u32 %s177_s15, 4  ;;  %s189_s4 = int_to_ptr.vmem [resolvable:$true] %s188_s4 }
  0x3b   : > { %s183_s14 = sadd.s32 %s2183_s28, %s2182_s30  ;;  %s3622_s1 = sand.u32 1, %s2543_s17  }
  0x3c   : > { %s2064_s11 = sshll.u32 %s183_s14, 3  ;;  %s2068_s6 = sshll.u32 %s3622_s1, 3 }
  0x3d   : > { %s185_s3 = scalar_lea.hbm %s3570_s0, %s2064_s11  ;;  %s2069_s25 = sshll.u32 %s2567_s23, 3 }
  0x3e   : > { %s186_s24 = sshll.u32 %s185_s3, 4  ;;  %s230_s13 = scalar_lea.hbm %s3572_s2, %s2069_s25  ;;  %s187_s24 = int_to_ptr.hbm [resolvable:$true] %s186_s24 }
  0x3f   : > { %s174_s7 = scalar_lea.sflag [#allocation3], %s173_s10  ;;  %s3623_s30 = smov 8  }
  0x40   : > { %s3624_s28 = smov 128   ;;  %s232_s14 = sshll.u32 %s230_s13, 4  ;;  %s233_s14 = int_to_ptr.hbm [resolvable:$true] %s232_s14 }
  0x41   : > { %2198 = dma.hbm_to_vmem [thread:$0]  (!%p2801_p6), %s187_s24, 9600, %s189_s4, %s174_s7, %s3624_s28, %s3624_s28, %s3623_s30  }
  0x42   : > { %s225_s15 = scalar_lea.vmem [#allocation7], %s2068_s6  ;;  %243 = sbr.rel (%p2743_p13) target bundleno = 327 (0x147), region = 32 }
  0x43   : > { %s234_s1 = sshll.u32 %s225_s15, 4  ;;  %s245_s12 = sand.u32 (!%p2743_p13), 1, %s2551_s19   ;;  %s235_s1 = int_to_ptr.vmem [resolvable:$true] %s234_s1 }
  0x44   : > { %2204 = dma.hbm_to_vmem [thread:$0]  (!%p2729_p10), %s233_s14, 128, %s235_s1, %s2735_s27  }
  0x45   : > { %s2184_s20 = smul.u32 (!%p2743_p13), 600, %s245_s12  ;;  %s246_s21 = scalar_lea.sflag (!%p2743_p13), [#allocation3], %s245_s12 }
  0x47   : > { %s2826_s25 = scalar_lea.vmem [#allocation2], %s2184_s20 }
  0x48   : > { %2510 = dma.done.wait (%p2766_p11), %s246_s21, 9600  }
  0x49   : > { %2512 = vsyncadd (%p2766_p11), %s246_s21, 4294957696  ;;  %s255_s13 = sand.u32 1, %s2678_s26   ;;  %s257_s24 = sand.u32 1, %s2539_s16  }
  0x4a   : > { %s2071_s6 = sshll.u32 %s257_s24, 4  ;;  %s256_s8 = scalar_lea.sflag [#allocation6], %s255_s13 }
  0x4b   : > { %s259_s27 = scalar_lea.vmem [#allocation5], %s2071_s6  ;;  %p3625_p5 = scmp.ne.s32.totalorder %s3606_s5, 0 }
  0x4d   : > { %2514 = dma.done.wait (%p3625_p5), %s256_s8, 384  }
  0x4e   : > { %2516 = vsyncadd (%p3625_p5), %s256_s8, 4294966912  ;;  %s3626_s22 = sld [smem:[#allocation13_spill]]  ;;  %s2838_s4 = sshll.u32 %s257_s24, 3 }
  0x4f   : > { %s269_s29 = scalar_lea.vmem [#allocation7], %s2838_s4  ;;  %s3627_s26 = sld [smem:[#allocation16_spill]] }
  0x54   : > { %s300_s9 = sand.u32 1, %s3626_s22  }
  0x55   : > { %s2185_s10 = smul.u32 24, %s300_s9  ;;  %p2073_p9 = scmp.ne.s32.totalorder %s3627_s26, 0 }
  0x57   : > { %s2844_s18 = scalar_lea.vmem [#allocation8], %s2185_s10  ;;  %306 = sbr.rel (%p2073_p9) target bundleno = 96 (0x60), region = 48 }
  0x5c   : > { %v2579_v0 = vmov 0.0  }
  0x5d   : > { %307 = vst [vmem:[%s2844_s18] sm:$0xff] %v2579_v0 }
  0x5e   : > { %308 = vst [vmem:[%s2844_s18 + $0x8] sm:$0xff] %v2579_v0 }
  0x5f   : > { %309 = vst [vmem:[%s2844_s18 + $0x10] sm:$0xff] %v2579_v0 }
  0x60 PF: > { %v310_v1 = vld [vmem:[%s259_s27] sm:$0xff]  ;;  %v2074_v2 = vld [vmem:[%s259_s27 + $0x8] sm:$0xff]  ;;  %v2580_v29 = vmov 683565275   ;;  %v2581_v31 = vmov 2475754826  }
  0x61   : > { %v2850_v3 = vmul.f32 1.5707964, %v310_v1  ;;  %v2852_v4 = vmul.f32 1.5707964, %v2074_v2  ;;  %v2582_v33 = vmov 2131351028  }
  0x62   : > { %v2583_v35 = vmov 2102212464   ;;  %v2584_v37 = vmov 920167782   ;;  %v2585_v44 = vmov 1326507024  }
  0x63   : > { %v315_v5 = vand.u32 2147483647, %v2850_v3  ;;  %v318_v6 = vand.u32 2139095040, %v2850_v3  ;;  %v2857_v7 = vmul.f32 2.0, %v2850_v3  ;;  %v937_v12 = vand.u32 2139095040, %v2852_v4  ;;  %s3634_s5 = sld [smem:[#allocation17_spill]] }
  0x64   : > { %s3635_s30 = sld [smem:[#allocation28_spill]]  ;;  %s1918_s1 = sshll.u32 %s2844_s18, 4  ;;  %s1919_s1 = int_to_ptr.vmem [resolvable:$true] %s1918_s1 }
  0x65   : > { %v319_v8 = vshrl.u32 %v318_v6, 23  ;;  %v322_v9 = vand.u32 8388607, %v315_v5  ;;  %v471_v10 = vand.u32 2147483647, %v2857_v7  ;;  %v474_v11 = vand.u32 2139095040, %v2857_v7 }
  0x66   : > { %v938_v20 = vshrl.u32 %v937_v12, 23  ;;  %s1905_s20 = scalar_lea.sflag [#allocation4], %s300_s9 }
  0x67   : > { %v2075_v13 = vadd.s32 4294967169, %v319_v8  ;;  %v323_v14 = vor.u32 8388608, %v322_v9  ;;  %v475_v15 = vshrl.u32 %v474_v11, 23  ;;  %v478_v19 = vand.u32 8388607, %v471_v10 }
  0x68   : > { %v2871_v27 = vadd.s32 4294967169, %v938_v20 }
  0x69   : > { %v325_v16 = vadd.s32 1, %v2075_v13  ;;  %v2864_v17 = vshll.u32 %v323_v14, 8  ;;  %v2078_v18 = vadd.s32 4294967169, %v475_v15  ;;  %v479_v26 = vor.u32 8388608, %v478_v19  ;;  %s2186_s11 = smul.u32 24, %s3634_s5 }
  0x6a   : > { %s2445_s6 = scalar_lea.hbm %s3635_s30, 48 }
  0x6b   : > { %vm326_vm0 = vcmp.gt.s32.totalorder %v325_v16, 0  ;;  %v481_v22 = vadd.s32 1, %v2078_v18  ;;  %v2869_v25 = vand.u32 65535, %v2864_v17  ;;  %v365_v63 = vshrl.u32 %v2864_v17, 16  ;;  %s1917_s28 = scalar_lea.hbm %s3635_s30, %s2186_s11 }
  0x6c   : > { %v327_v21 = vsel %vm326_vm0, %v325_v16, 0  ;;  %v2893_v0 = vshll.u32 %v479_v26, 8  ;;  %s1920_s12 = sshll.u32 %s1917_s28, 4  ;;  %s1921_s12 = int_to_ptr.hbm [resolvable:$true] %s1920_s12 }
  0x6d   : > { %v328_v23 = vshrl.u32 %v327_v21, 5  ;;  %v329_v24 = vand.u32 31, %v327_v21  ;;  %vm482_vm2 = vcmp.gt.s32.totalorder %v481_v22, 0  ;;  %s2439_s21 = sshra.s32 %s1921_s12, 4  ;;  %s2440_s21 = int_to_ptr.hbm [resolvable:$true] %s2439_s21 }
  0x6e   : > { %v483_v49 = vsel %vm482_vm2, %v481_v22, 0  ;;  %p2446_p11 = scmp.lt.s32.totalorder %s2440_s21, %s3635_s30 }
  0x6f   : > { %v330_v28 = vsub.s32 32, %v329_v24  ;;  %v332_v30 = vshll.u32 %v2580_v29, %v329_v24  ;;  %v335_v32 = vshll.u32 %v2581_v31, %v329_v24  ;;  %v338_v34 = vshll.u32 %v2582_v33, %v329_v24 }
  0x70   : > { %v341_v36 = vshll.u32 %v2583_v35, %v329_v24  ;;  %v344_v38 = vshll.u32 %v2584_v37, %v329_v24  ;;  %vm347_vm1 = vcmp.lt.s32.totalorder %v328_v23, 1  ;;  %vm348_vm3 = vcmp.lt.s32.totalorder %v328_v23, 2 }
  0x71   : > { %v331_v39 = vshrl.u32 %v2580_v29, %v330_v28  ;;  %v333_v40 = vshrl.u32 %v2581_v31, %v330_v28  ;;  %v336_v41 = vshrl.u32 %v2582_v33, %v330_v28  ;;  %v339_v42 = vshrl.u32 %v2583_v35, %v330_v28 }
  0x72   : > { %v342_v43 = vshrl.u32 %v2584_v37, %v330_v28  ;;  %v345_v45 = vshrl.u32 %v2585_v44, %v330_v28  ;;  %vm350_vm4 = vcmp.lt.s32.totalorder %v328_v23, 4  ;;  %vm349_vm5 = vcmp.lt.s32.totalorder %v328_v23, 3 }
  0x73   : > { %v334_v46 = vor.u32 %v333_v40, %v332_v30  ;;  %v337_v47 = vor.u32 %v336_v41, %v335_v32  ;;  %v340_v48 = vor.u32 %v339_v42, %v338_v34  ;;  %v2884_v52 = vand.u32 31, %v483_v49 }
  0x74   : > { %v343_v50 = vor.u32 %v342_v43, %v341_v36  ;;  %v346_v51 = vor.u32 %v345_v45, %v344_v38  ;;  %v2900_v8 = vshrl.u32 %v483_v49, 5 }
  0x75   : > { %v351_v53 = vsel %vm347_vm1, %v331_v39, %v334_v46  ;;  %v352_v54 = vsel %vm350_vm4, %v340_v48, 2102212464  ;;  %v355_v55 = vsel %vm347_vm1, %v334_v46, %v337_v47  ;;  %v359_v56 = vsel %vm347_vm1, %v337_v47, %v340_v48 }
  0x76   : > { %v353_v57 = vsel %vm349_vm5, %v337_v47, %v352_v54  ;;  %v356_v58 = vsel %vm350_vm4, %v343_v50, 920167782  ;;  %v360_v59 = vsel %vm350_vm4, %v346_v51, 1326507024  ;;  %v2890_v60 = vsub.s32 32, %v2884_v52 }
  0x77   : > { %v357_v61 = vsel %vm349_vm5, %v340_v48, %v356_v58  ;;  %v361_v62 = vsel %vm349_vm5, %v343_v50, %v360_v59  ;;  %v2896_v1 = vsel %vm348_vm3, %v351_v53, %v353_v57  ;;  %v488_v14 = vshll.u32 %v2580_v29, %v2884_v52 }
  0x78   : > { %v358_v2 = vsel %vm348_vm3, %v355_v55, %v357_v61  ;;  %v362_v6 = vsel %vm348_vm3, %v359_v56, %v361_v62  ;;  %v489_v15 = vshrl.u32 %v2581_v31, %v2890_v60  ;;  %v491_v16 = vshll.u32 %v2581_v31, %v2884_v52 }
  0x79   : > { %v366_v9 = vand.u32 65535, %v362_v6  ;;  %v367_v11 = vshrl.u32 %v362_v6, 16  ;;  %v388_v12 = vand.u32 65535, %v358_v2  ;;  %v389_v13 = vshrl.u32 %v358_v2, 16 }
  0x7a   : > { %v492_v18 = vshrl.u32 %v2582_v33, %v2890_v60  ;;  %v494_v22 = vshll.u32 %v2582_v33, %v2884_v52  ;;  %v2916_v45 = vor.u32 %v489_v15, %v488_v14  ;;  %v2586_v46 = vmov 0  }
  0x7b   : > { %v368_v19 = vmul.u32 %v366_v9, %v2869_v25  ;;  %v369_v20 = vmul.u32 %v367_v11, %v2869_v25  ;;  %v370_v21 = vmul.u32 %v366_v9, %v365_v63  ;;  %v371_v23 = vmul.u32 %v367_v11, %v365_v63 }
  0x7c   : > { %v390_v24 = vmul.u32 %v388_v12, %v2869_v25  ;;  %v391_v26 = vmul.u32 %v389_v13, %v2869_v25  ;;  %v392_v28 = vmul.u32 %v388_v12, %v365_v63  ;;  %v393_v36 = vmul.u32 %v389_v13, %v365_v63 }
  0x7d   : > { %v372_v30 = vshll.u32 %v369_v20, 16  ;;  %v373_v32 = vshrl.u32 %v369_v20, 16  ;;  %v374_v34 = vshll.u32 %v370_v21, 16  ;;  %v375_v38 = vshrl.u32 %v370_v21, 16 }
  0x7e   : > { %v394_v39 = vshll.u32 %v391_v26, 16  ;;  %v395_v40 = vshrl.u32 %v391_v26, 16  ;;  %v396_v41 = vshll.u32 %v392_v28, 16  ;;  %v397_v43 = vshrl.u32 %v392_v28, 16 }
  0x7f   : > { %vm376_vm6 = vc.u32 %v368_v19, %v372_v30  ;;  %v378_v42 = vadd.s32 %v372_v30, %v368_v19  ;;  %v495_v25 = vshrl.u32 %v2583_v35, %v2890_v60  ;;  %v497_v51 = vshll.u32 %v2583_v35, %v2884_v52 }
  0x80   : > { %v377_v47 = vsel %vm376_vm6, 1, %v2586_v46  ;;  %vm398_vm7 = vc.u32 %v390_v24, %v394_v39  ;;  %v400_v48 = vadd.s32 %v394_v39, %v390_v24  ;;  %v493_v55 = vor.u32 %v492_v18, %v491_v16 }
  0x81   : > { %v379_v49 = vadd.s32 %v377_v47, %v371_v23  ;;  %vm380_vm8 = vc.u32 %v378_v42, %v374_v34  ;;  %v399_v50 = vsel %vm398_vm7, 1, %v2586_v46  ;;  %v496_v58 = vor.u32 %v495_v25, %v494_v22 }
  0x82   : > { %v381_v53 = vsel %vm380_vm8, 1, %v2586_v46  ;;  %v401_v54 = vadd.s32 %v399_v50, %v393_v36  ;;  %vm402_vm9 = vc.u32 %v400_v48, %v396_v41  ;;  %v498_v59 = vshrl.u32 %v2584_v37, %v2890_v60 }
  0x83   : > { %v383_v56 = vadd.s32 %v381_v53, %v379_v49  ;;  %v403_v57 = vsel %vm402_vm9, 1, %v2586_v46  ;;  %v500_v62 = vshll.u32 %v2584_v37, %v2884_v52  ;;  %v501_v63 = vshrl.u32 %v2585_v44, %v2890_v60 }
  0x84   : > { %v405_v61 = vadd.s32 %v403_v57, %v401_v54  ;;  %vm503_vm10 = vcmp.lt.s32.totalorder %v2900_v8, 1  ;;  %v2933_v6 = vadd.s32 %v400_v48, %v396_v41  ;;  %v499_v9 = vor.u32 %v498_v59, %v497_v51 }
  0x85   : > { %v384_v2 = vadd.s32 %v383_v56, %v373_v32  ;;  %vm505_vm11 = vcmp.lt.s32.totalorder %v2900_v8, 3  ;;  %v502_v12 = vor.u32 %v501_v63, %v500_v62  ;;  %vm504_vm12 = vcmp.lt.s32.totalorder %v2900_v8, 2 }
  0x86   : > { %v406_v11 = vadd.s32 %v405_v61, %v395_v40  ;;  %vm506_vm13 = vcmp.lt.s32.totalorder %v2900_v8, 4  ;;  %v511_v52 = vsel %vm503_vm10, %v2916_v45, %v493_v55  ;;  %v944_v15 = vadd.s32 1, %v2871_v27 }
  0x87   : > { %v2938_v13 = vadd.s32 %v384_v2, %v375_v38  ;;  %v512_v14 = vsel %vm506_vm13, %v499_v9, 920167782  ;;  %v520_v19 = vand.u32 65535, %v2893_v0  ;;  %v521_v20 = vshrl.u32 %v2893_v0, 16 }
  0x88   : > { %v407_v16 = vadd.s32 %v406_v11, %v397_v43  ;;  %v513_v18 = vsel %vm505_vm11, %v496_v58, %v512_v14  ;;  %v408_v21 = vmul.u32 %v2864_v17, %v2896_v1  ;;  %v515_v27 = vsel %vm503_vm10, %v493_v55, %v496_v58 }
  0x89   : > { %vm410_vm14 = vc.u32 %v2938_v13, %v2933_v6  ;;  %v514_v22 = vsel %vm504_vm12, %v511_v52, %v513_v18  ;;  %v516_v24 = vsel %vm506_vm13, %v502_v12, 1326507024  ;;  %vm945_vm15 = vcmp.gt.s32.totalorder %v944_v15, 0 }
  0x8a   : > { %v411_v23 = vadd.s32 1, %v407_v16  ;;  %v544_v26 = vand.u32 65535, %v514_v22  ;;  %v545_v28 = vshrl.u32 %v514_v22, 16  ;;  %v517_v30 = vsel %vm505_vm11, %v499_v9, %v516_v24 }
  0x8b   : > { %v518_v1 = vsel %vm504_vm12, %v515_v27, %v517_v30  ;;  %v487_v41 = vshrl.u32 %v2580_v29, %v2890_v60  ;;  %v508_v42 = vsel %vm506_vm13, %v496_v58, 2102212464  ;;  %v946_v53 = vsel %vm945_vm15, %v944_v15, 0 }
  0x8c   : > { %v412_v17 = vsel %vm410_vm14, %v411_v23, %v407_v16  ;;  %v546_v32 = vmul.u32 %v544_v26, %v520_v19  ;;  %v547_v34 = vmul.u32 %v545_v28, %v520_v19  ;;  %v522_v38 = vand.u32 65535, %v518_v1 }
  0x8d   : > { %v413_v36 = vadd.s32 %v412_v17, %v408_v21  ;;  %v523_v39 = vshrl.u32 %v518_v1, 16  ;;  %v548_v40 = vmul.u32 %v544_v26, %v521_v20  ;;  %v549_v50 = vmul.u32 %v545_v28, %v521_v20 }
  0x8e   : > { %v550_v43 = vshll.u32 %v547_v34, 16  ;;  %v524_v48 = vmul.u32 %v522_v38, %v520_v19  ;;  %v526_v49 = vmul.u32 %v522_v38, %v521_v20  ;;  %v507_v60 = vsel %vm503_vm10, %v487_v41, %v2916_v45 }
  0x8f   : > { %v414_v47 = vadd.s32 536870912, %v413_v36  ;;  %v525_v25 = vmul.u32 %v523_v39, %v520_v19  ;;  %v552_v51 = vshll.u32 %v548_v40, 16  ;;  %v527_v56 = vmul.u32 %v523_v39, %v521_v20 }
  0x90   : > { %vm554_vm0 = vc.u32 %v546_v32, %v550_v43  ;;  %v530_v59 = vshll.u32 %v526_v49, 16  ;;  %v509_v58 = vsel %vm505_vm11, %v493_v55, %v508_v42  ;;  %v556_v62 = vadd.s32 %v550_v43, %v546_v32 }
  0x91   : > { %v2969_v54 = vshrl.u32 %v414_v47, 30  ;;  %v528_v57 = vshll.u32 %v525_v25, 16  ;;  %v555_v61 = vsel %vm554_vm0, 1, %v2586_v46  ;;  %v948_v9 = vand.u32 31, %v946_v53 }
  0x92   : > { %v551_v12 = vshrl.u32 %v547_v34, 16  ;;  %v557_v52 = vadd.s32 %v555_v61, %v549_v50  ;;  %vm558_vm2 = vc.u32 %v556_v62, %v552_v51  ;;  %v529_v15 = vshrl.u32 %v525_v25, 16 }
  0x93   : > { %v416_v63 = vshll.u32 %v2969_v54, 30  ;;  %vm532_vm1 = vc.u32 %v524_v48, %v528_v57  ;;  %v534_v2 = vadd.s32 %v528_v57, %v524_v48  ;;  %v531_v16 = vshrl.u32 %v526_v49, 16 }
  0x94   : > { %v533_v11 = vsel %vm532_vm1, 1, %v2586_v46  ;;  %v553_v18 = vshrl.u32 %v548_v40, 16  ;;  %v559_v19 = vsel %vm558_vm2, 1, %v2586_v46  ;;  %v2986_v24 = vadd.s32 %v556_v62, %v552_v51 }
  0x95   : > { %v2979_v14 = vsub.s32 %v413_v36, %v416_v63  ;;  %v535_v45 = vadd.s32 %v533_v11, %v527_v56  ;;  %vm536_vm3 = vc.u32 %v534_v2, %v530_v59  ;;  %v561_v22 = vadd.s32 %v559_v19, %v557_v52 }
  0x96   : > { %v537_v55 = vsel %vm536_vm3, 1, %v2586_v46  ;;  %v510_v30 = vsel %vm504_vm12, %v507_v60, %v509_v58  ;;  %v2990_v17 = vsub.s32 32, %v948_v9  ;;  %v934_v38 = vand.u32 2147483647, %v2852_v4 }
  0x97   : > { %vm418_vm4 = vcmp.lt.s32.totalorder %v2979_v14, 0  ;;  %v419_v20 = vsub.s32 0, %v2979_v14  ;;  %v539_v21 = vadd.s32 %v537_v55, %v535_v45  ;;  %v562_v26 = vadd.s32 %v561_v22, %v551_v12 }
  0x98   : > { %v564_v36 = vmul.u32 %v2893_v0, %v510_v30  ;;  %v954_v39 = vshll.u32 %v2581_v31, %v948_v9  ;;  %v955_v8 = vshrl.u32 %v2582_v33, %v2990_v17  ;;  %v957_v41 = vshll.u32 %v2582_v33, %v948_v9 }
  0x99   : > { %v420_v27 = vsel %vm418_vm4, %v419_v20, %v2979_v14  ;;  %v540_v23 = vadd.s32 %v539_v21, %v529_v15  ;;  %v563_v32 = vadd.s32 %v562_v26, %v553_v18  ;;  %v958_v43 = vshrl.u32 %v2583_v35, %v2990_v17 }
  0x9a   : > { %v421_v28 = vclz %v420_v27  ;;  %v963_v0 = vshll.u32 %v2584_v37, %v948_v9  ;;  %v964_v47 = vshrl.u32 %v2585_v44, %v2990_v17  ;;  %v3007_v25 = vshrl.u32 %v946_v53, 5 }
  0x9b   : > { %v2992_v1 = vadd.s32 %v540_v23, %v531_v16  ;;  %v567_v40 = vadd.s32 1, %v563_v32  ;;  %v941_v51 = vand.u32 8388607, %v934_v38  ;;  %v960_v56 = vshll.u32 %v2583_v35, %v948_v9 }
  0x9c   : > { %v2076_v34 = vadd.s32 4294967294, %v421_v28  ;;  %v961_v57 = vshrl.u32 %v2584_v37, %v2990_v17  ;;  %v3014_v60 = vor.u32 %v955_v8, %v954_v39  ;;  %v3016_v58 = vor.u32 %v958_v43, %v957_v41 }
  0x9d   : > { %vm566_vm5 = vc.u32 %v2992_v1, %v2986_v24  ;;  %v965_v61 = vor.u32 %v964_v47, %v963_v0  ;;  %v409_v53 = vadd.s32 %v2933_v6, %v2938_v13  ;;  %vm966_vm7 = vcmp.lt.s32.totalorder %v3007_v25, 1 }
  0x9e   : > { %vm2077_vm6 = vcmp.lt.s32.totalorder %v2076_v34, 0  ;;  %v568_v48 = vsel %vm566_vm5, %v567_v40, %v563_v32  ;;  %vm969_vm8 = vcmp.lt.s32.totalorder %v3007_v25, 4  ;;  %v951_v11 = vshll.u32 %v2580_v29, %v948_v9 }
  0x9f   : > { %v424_v42 = vsel %vm2077_vm6, 0, %v2076_v34  ;;  %v569_v50 = vadd.s32 %v568_v48, %v564_v36  ;;  %v952_v12 = vshrl.u32 %v2581_v31, %v2990_v17  ;;  %v942_v52 = vor.u32 8388608, %v941_v51 }
  0xa0   : > { %v429_v49 = vsub.s32 4294967266, %v424_v42  ;;  %v425_v62 = vsub.s32 32, %v424_v42  ;;  %v962_v15 = vor.u32 %v961_v57, %v960_v56  ;;  %vm968_vm9 = vcmp.lt.s32.totalorder %v3007_v25, 3 }
  0xa1   : > { %v570_v59 = vadd.s32 536870912, %v569_v50  ;;  %vm967_vm10 = vcmp.lt.s32.totalorder %v3007_v25, 2  ;;  %v978_v6 = vsel %vm966_vm7, %v3014_v60, %v3016_v58  ;;  %v979_v13 = vsel %vm969_vm8, %v965_v61, 1326507024 }
  0xa2   : > { %v430_v63 = vadd.s32 127, %v429_v49  ;;  %v426_v45 = vshll.u32 %v2979_v14, %v424_v42  ;;  %v427_v9 = vshrl.u32 %v409_v53, %v425_v62  ;;  %v3037_v18 = vor.u32 %v952_v12, %v951_v11 }
  0xa3   : > { %v3022_v2 = vshrl.u32 %v570_v59, 30  ;;  %v980_v19 = vsel %vm968_vm9, %v962_v15, %v979_v13  ;;  %v975_v20 = vsel %vm969_vm8, %v962_v15, 920167782  ;;  %v3045_v22 = vshll.u32 %v942_v52, 8 }
  0xa4   : > { %v431_v16 = vshll.u32 %v430_v63, 23  ;;  %v981_v21 = vsel %vm967_vm10, %v978_v6, %v980_v19  ;;  %v428_v14 = vor.u32 %v427_v9, %v426_v45  ;;  %v974_v34 = vsel %vm966_vm7, %v3037_v18, %v3014_v60 }
  0xa5   : > { %v572_v55 = vshll.u32 %v3022_v2, 30  ;;  %v985_v27 = vand.u32 65535, %v981_v21  ;;  %v986_v23 = vshrl.u32 %v981_v21, 16  ;;  %v983_v26 = vand.u32 65535, %v3045_v22 }
  0xa6   : > { %v984_v28 = vshrl.u32 %v3045_v22, 16  ;;  %v432_v30 = vor.u32 4788187, %v431_v16  ;;  %v976_v36 = vsel %vm968_vm9, %v3016_v58, %v975_v20  ;;  %v435_v0 = vcvt.s32.f32 %v428_v14 }
  0xa7   : > { %v3049_v32 = vsub.s32 %v569_v50, %v572_v55  ;;  %v988_v39 = vmul.u32 %v986_v23, %v983_v26  ;;  %v987_v40 = vmul.u32 %v985_v27, %v983_v26  ;;  %v977_v41 = vsel %vm967_vm10, %v974_v34, %v976_v36 }
  0xa8   : > { %v989_v8 = vmul.u32 %v985_v27, %v984_v28  ;;  %v433_v43 = vand.u32 2147483647, %v432_v30  ;;  %v1008_v50 = vshrl.u32 %v977_v41, 16  ;;  %v1007_v51 = vand.u32 65535, %v977_v41 }
  0xa9   : > { %v991_v42 = vshll.u32 %v988_v39, 16  ;;  %v575_v47 = vsub.s32 0, %v3049_v32  ;;  %vm574_vm11 = vcmp.lt.s32.totalorder %v3049_v32, 0  ;;  %v990_v59 = vmul.u32 %v986_v23, %v984_v28 }
  0xaa   : > { %v993_v48 = vshll.u32 %v989_v8, 16  ;;  %v436_v56 = vmul.f32 %v435_v0, %v433_v43  ;;  %v1010_v53 = vmul.u32 %v1008_v50, %v983_v26  ;;  %v1011_v63 = vmul.u32 %v1007_v51, %v984_v28 }
  0xab   : > { %vm995_vm12 = vc.u32 %v987_v40, %v991_v42  ;;  %v997_v49 = vadd.s32 %v991_v42, %v987_v40  ;;  %v576_v57 = vsel %vm574_vm11, %v575_v47, %v3049_v32  ;;  %v1009_v52 = vmul.u32 %v1007_v51, %v983_v26 }
  0xac   : > { %v996_v61 = vsel %vm995_vm12, 1, %v2586_v46  ;;  %v577_v62 = vclz %v576_v57  ;;  %v437_v11 = vxor.u32 2147483648, %v436_v56  ;;  %vm317_vm14 = vcmp.lt.s32.totalorder %v2850_v3, 0 }
  0xad   : > { %vm999_vm13 = vc.u32 %v997_v49, %v993_v48  ;;  %v998_v12 = vadd.s32 %v996_v61, %v990_v59  ;;  %v992_v6 = vshrl.u32 %v988_v39, 16  ;;  %v1012_v45 = vmul.u32 %v1008_v50, %v984_v28 }
  0xae   : > { %v1000_v15 = vsel %vm999_vm13, 1, %v2586_v46  ;;  %v1013_v9 = vshll.u32 %v1010_v53, 16  ;;  %vm3068_vm15 = vcmp.le.f32.partialorder %v315_v5, 0.7853982  ;;  %v2079_v55 = vadd.s32 4294967294, %v577_v62 }
  0xaf   : > { %v1002_v13 = vadd.s32 %v1000_v15, %v998_v12  ;;  %v1015_v19 = vshll.u32 %v1011_v63, 16  ;;  %v438_v20 = vsel %vm317_vm14, %v437_v11, %v436_v56  ;;  %v950_v21 = vshrl.u32 %v2580_v29, %v2990_v17 }
  0xb0   : > { %vm1017_vm0 = vc.u32 %v1009_v52, %v1013_v9  ;;  %v3077_v27 = vmul.f32 2.0, %v2852_v4  ;;  %v971_v23 = vsel %vm969_vm8, %v3016_v58, 2102212464  ;;  %v1019_v14 = vadd.s32 %v1013_v9, %v1009_v52 }
  0xb1   : > { %v1018_v5 = vsel %vm1017_vm0, 1, %v2586_v46  ;;  %v994_v26 = vshrl.u32 %v989_v8, 16  ;;  %v1003_v28 = vadd.s32 %v1002_v13, %v992_v6  ;;  %v3086_v34 = vsel %vm3068_vm15, %v2850_v3, %v438_v20 }
  0xb2   : > { %v1020_v30 = vadd.s32 %v1018_v5, %v1012_v45  ;;  %vm2080_vm1 = vcmp.lt.s32.totalorder %v2079_v55, 0  ;;  %v1014_v17 = vshrl.u32 %v1010_v53, 16  ;;  %vm1021_vm2 = vc.u32 %v1019_v14, %v1015_v19 }
  0xb3   : > { %v970_v36 = vsel %vm966_vm7, %v950_v21, %v3037_v18  ;;  %v972_v58 = vsel %vm968_vm9, %v3014_v60, %v971_v23  ;;  %v1022_v39 = vsel %vm1021_vm2, 1, %v2586_v46  ;;  %v1093_v40 = vand.u32 2139095040, %v3077_v27 }
  0xb4   : > { %v1016_v8 = vshrl.u32 %v1011_v63, 16  ;;  %v1024_v41 = vadd.s32 %v1022_v39, %v1020_v30  ;;  %v3098_v42 = vmul.f32 %v3086_v34, %v3086_v34  ;;  %v580_v43 = vsel %vm2080_vm1, 0, %v2079_v55 }
  0xb5   : > { %v3100_v0 = vadd.s32 %v1003_v28, %v994_v26  ;;  %v3102_v47 = vadd.s32 %v1019_v14, %v1015_v19  ;;  %v973_v18 = vsel %vm967_vm10, %v970_v36, %v972_v58  ;;  %v1094_v49 = vshrl.u32 %v1093_v40, 23 }
  0xb6   : > { %v1025_v48 = vadd.s32 %v1024_v41, %v1014_v17  ;;  %v444_v60 = vmul.f32 -0.001358992, %v3098_v42  ;;  %v585_v50 = vsub.s32 4294967266, %v580_v43  ;;  %v1027_v56 = vmul.u32 %v3045_v22, %v973_v18 }
  0xb7   : > { %vm1029_vm3 = vc.u32 %v3100_v0, %v3102_v47  ;;  %v2090_v57 = vadd.s32 4294967169, %v1094_v49  ;;  %v451_v59 = vmul.f32 -0.00019511016, %v3098_v42  ;;  %v565_v25 = vadd.s32 %v2986_v24, %v2992_v1 }
  0xb8   : > { %v1026_v51 = vadd.s32 %v1025_v48, %v1016_v8  ;;  %v445_v53 = vadd.f32 0.041655596, %v444_v60  ;;  %v581_v62 = vsub.s32 32, %v580_v43  ;;  %v586_v11 = vadd.s32 127, %v585_v50 }
  0xb9   : > { %v1100_v63 = vadd.s32 1, %v2090_v57  ;;  %v439_v52 = vsub.s32 4, %v2969_v54  ;;  %v452_v22 = vadd.f32 0.008332121, %v451_v59  ;;  %v582_v6 = vshll.u32 %v3049_v32, %v580_v43 }
  0xba   : > { %v1030_v61 = vadd.s32 1, %v1026_v51  ;;  %v446_v45 = vmul.f32 %v445_v53, %v3098_v42  ;;  %v583_v9 = vshrl.u32 %v565_v25, %v581_v62  ;;  %v1090_v19 = vand.u32 2147483647, %v3077_v27 }
  0xbb   : > { %vm1101_vm4 = vcmp.gt.s32.totalorder %v1100_v63, 0  ;;  %v587_v20 = vshll.u32 %v586_v11, 23  ;;  %v440_v1 = vsel %vm317_vm14, %v439_v52, %v2969_v54  ;;  %v453_v23 = vmul.f32 %v452_v22, %v3098_v42 }
  0xbc   : > { %v1031_v12 = vsel %vm1029_vm3, %v1030_v61, %v1026_v51  ;;  %v1102_v13 = vsel %vm1101_vm4, %v1100_v63, 0  ;;  %v447_v32 = vadd.f32 -0.4999988, %v446_v45  ;;  %v584_v14 = vor.u32 %v583_v9, %v582_v6 }
  0xbd   : > { %v1032_v15 = vadd.s32 %v1031_v12, %v1027_v56  ;;  %v1104_v24 = vand.u32 31, %v1102_v13  ;;  %v1097_v28 = vand.u32 8388607, %v1090_v19  ;;  %v3130_v30 = vsel %vm3068_vm15, 0, %v440_v1 }
  0xbe   : > { %v588_v17 = vor.u32 4788187, %v587_v20  ;;  %v454_v8 = vadd.f32 -0.16666654, %v453_v23  ;;  %v3140_v41 = vshrl.u32 %v1102_v13, 5  ;;  %v448_v18 = vmul.f32 %v447_v32, %v3098_v42 }
  0xbf   : > { %v1033_v55 = vadd.s32 536870912, %v1032_v15  ;;  %v3123_v5 = vsub.s32 32, %v1104_v24  ;;  %v1107_v54 = vshll.u32 %v2580_v29, %v1104_v24  ;;  %v1110_v39 = vshll.u32 %v2581_v31, %v1104_v24 }
  0xc0   : > { %v1113_v16 = vshll.u32 %v2582_v33, %v1104_v24  ;;  %v591_v48 = vcvt.s32.f32 %v584_v14  ;;  %v1098_v60 = vor.u32 8388608, %v1097_v28  ;;  %v1119_v51 = vshll.u32 %v2584_v37, %v1104_v24 }
  0xc1   : > { %v3120_v21 = vshrl.u32 %v1033_v55, 30  ;;  %v1108_v58 = vshrl.u32 %v2581_v31, %v3123_v5  ;;  %v1111_v40 = vshrl.u32 %v2582_v33, %v3123_v5  ;;  %v1114_v43 = vshrl.u32 %v2583_v35, %v3123_v5 }
  0xc2   : > { %v1116_v31 = vshll.u32 %v2583_v35, %v1104_v24  ;;  %v1117_v50 = vshrl.u32 %v2584_v37, %v3123_v5  ;;  %v589_v56 = vand.u32 2147483647, %v588_v17  ;;  %v1120_v59 = vshrl.u32 %v2585_v44, %v3123_v5 }
  0xc3   : > { %v1035_v26 = vshll.u32 %v3120_v21, 30  ;;  %v3152_v33 = vor.u32 %v1108_v58, %v1107_v54  ;;  %v3154_v57 = vor.u32 %v1111_v40, %v1110_v39  ;;  %v3159_v53 = vor.u32 %v1114_v43, %v1113_v16 }
  0xc4   : > { %v1118_v25 = vor.u32 %v1117_v50, %v1116_v31  ;;  %vm1122_vm6 = vcmp.lt.s32.totalorder %v3140_v41, 1  ;;  %v455_v35 = vmul.f32 %v454_v8, %v3098_v42  ;;  %v459_v62 = vadd.s32 3, %v3130_v30 }
  0xc5   : > { %v3133_v36 = vsub.s32 %v1032_v15, %v1035_v26  ;;  %v1121_v63 = vor.u32 %v1120_v59, %v1119_v51  ;;  %vm1124_vm7 = vcmp.lt.s32.totalorder %v3140_v41, 3  ;;  %vm1125_vm8 = vcmp.lt.s32.totalorder %v3140_v41, 4 }
  0xc6   : > { %v3166_v11 = vshll.u32 %v1098_v60, 8  ;;  %vm1123_vm9 = vcmp.lt.s32.totalorder %v3140_v41, 2  ;;  %v1130_v12 = vsel %vm1122_vm6, %v3152_v33, %v3154_v57  ;;  %v1131_v42 = vsel %vm1125_vm8, %v1118_v25, 920167782 }
  0xc7   : > { %vm1037_vm5 = vcmp.lt.s32.totalorder %v3133_v36, 0  ;;  %v1038_v49 = vsub.s32 0, %v3133_v36  ;;  %v3175_v52 = vadd.f32 1.0, %v448_v18  ;;  %vm473_vm10 = vcmp.lt.s32.totalorder %v2857_v7, 0 }
  0xc8   : > { %v592_v15 = vmul.f32 %v591_v48, %v589_v56  ;;  %v1132_v22 = vsel %vm1124_vm7, %v3159_v53, %v1131_v42  ;;  %v456_v6 = vadd.f32 1.0, %v455_v35  ;;  %v1028_v13 = vadd.s32 %v3102_v47, %v3100_v0 }
  0xc9   : > { %v1039_v61 = vsel %vm1037_vm5, %v1038_v49, %v3133_v36  ;;  %v1134_v45 = vsel %vm1122_vm6, %v3154_v57, %v3159_v53  ;;  %v1133_v55 = vsel %vm1123_vm9, %v1130_v12, %v1132_v22  ;;  %v1135_v20 = vsel %vm1125_vm8, %v1121_v63, 1326507024 }
  0xca   : > { %v1040_v37 = vclz %v1039_v61  ;;  %v1139_v24 = vand.u32 65535, %v3166_v11  ;;  %v1136_v0 = vsel %vm1124_vm7, %v1118_v25, %v1135_v20  ;;  %v3195_v47 = vand.u32 3, %v459_v62 }
  0xcb   : > { %v593_v14 = vxor.u32 2147483648, %v592_v15  ;;  %v1137_v26 = vsel %vm1123_vm9, %v1134_v45, %v1136_v0  ;;  %v1140_v28 = vshrl.u32 %v3166_v11, 16  ;;  %vm3202_vm12 = vcmp.le.f32.partialorder %v471_v10, 0.7853982 }
  0xcc   : > { %v2088_v44 = vadd.s32 4294967294, %v1040_v37  ;;  %v1141_v58 = vand.u32 65535, %v1137_v26  ;;  %v1142_v39 = vshrl.u32 %v1137_v26, 16  ;;  %v3207_v40 = vmul.f32 %v456_v6, %v3086_v34 }
  0xcd   : > { %v466_v8 = vxor.u32 2147483648, %v3175_v52  ;;  %vm936_vm13 = vcmp.lt.s32.totalorder %v2852_v4, 0  ;;  %v1163_v16 = vand.u32 65535, %v1133_v55  ;;  %v1164_v43 = vshrl.u32 %v1133_v55, 16 }
  0xce   : > { %vm2089_vm11 = vcmp.lt.s32.totalorder %v2088_v44, 0  ;;  %vm3213_vm14 = vcmp.le.f32.partialorder %v934_v38, 0.7853982  ;;  %v1143_v60 = vmul.u32 %v1141_v58, %v1139_v24  ;;  %v1144_v49 = vmul.u32 %v1142_v39, %v1139_v24 }
  0xcf   : > { %v1043_v9 = vsel %vm2089_vm11, 0, %v2088_v44  ;;  %v594_v34 = vsel %vm473_vm10, %v593_v14, %v592_v15  ;;  %v1145_v31 = vmul.u32 %v1141_v58, %v1140_v28  ;;  %v1146_v50 = vmul.u32 %v1142_v39, %v1140_v28 }
  0xd0   : > { %v1044_v1 = vsub.s32 32, %v1043_v9  ;;  %v1045_v23 = vshll.u32 %v3133_v36, %v1043_v9  ;;  %v1048_v32 = vsub.s32 4294967266, %v1043_v9  ;;  %v1166_v51 = vmul.u32 %v1164_v43, %v1139_v24 }
  0xd1   : > { %v1147_v61 = vshll.u32 %v1144_v49, 16  ;;  %v1165_v25 = vmul.u32 %v1163_v16, %v1139_v24  ;;  %v1058_v35 = vsub.s32 4, %v3120_v21  ;;  %v1149_v38 = vshll.u32 %v1145_v31, 16 }
  0xd2   : > { %v1046_v54 = vshrl.u32 %v1028_v13, %v1044_v1  ;;  %v1049_v36 = vadd.s32 127, %v1048_v32  ;;  %v1167_v62 = vmul.u32 %v1163_v16, %v1140_v28  ;;  %v1168_v37 = vmul.u32 %v1164_v43, %v1140_v28 }
  0xd3   : > { %vm1151_vm15 = vc.u32 %v1143_v60, %v1147_v61  ;;  %v1153_v44 = vadd.s32 %v1147_v61, %v1143_v60  ;;  %v1169_v12 = vshll.u32 %v1166_v51, 16  ;;  %v1106_v42 = vshrl.u32 %v2580_v29, %v3123_v5 }
  0xd4   : > { %v1047_v18 = vor.u32 %v1046_v54, %v1045_v23  ;;  %v1050_v48 = vshll.u32 %v1049_v36, 23  ;;  %v1148_v15 = vshrl.u32 %v1144_v49, 16  ;;  %v1152_v22 = vsel %vm1151_vm15, 1, %v2586_v46 }
  0xd5   : > { %v1171_v6 = vshll.u32 %v1167_v62, 16  ;;  %v1154_v45 = vadd.s32 %v1152_v22, %v1146_v50  ;;  %vm1155_vm0 = vc.u32 %v1153_v44, %v1149_v38  ;;  %vm1173_vm1 = vc.u32 %v1165_v25, %v1169_v12 }
  0xd6   : > { %v1051_v56 = vor.u32 4788187, %v1050_v48  ;;  %v1054_v59 = vcvt.s32.f32 %v1047_v18  ;;  %v1127_v9 = vsel %vm1125_vm8, %v3159_v53, 2102212464  ;;  %v1156_v55 = vsel %vm1155_vm0, 1, %v2586_v46 }
  0xd7   : > { %v1174_v20 = vsel %vm1173_vm1, 1, %v2586_v46  ;;  %v1175_v24 = vadd.s32 %v1169_v12, %v1165_v25  ;;  %v1150_v23 = vshrl.u32 %v1145_v31, 16  ;;  %v1158_v29 = vadd.s32 %v1156_v55, %v1154_v45 }
  0xd8   : > { %v1052_v63 = vand.u32 2147483647, %v1051_v56  ;;  %v1176_v5 = vadd.s32 %v1174_v20, %v1168_v37  ;;  %v3231_v32 = vsel %vm3202_vm12, %v2857_v7, %v594_v34  ;;  %v1126_v0 = vsel %vm1122_vm6, %v1106_v42, %v3152_v33 }
  0xd9   : > { %v1170_v14 = vshrl.u32 %v1166_v51, 16  ;;  %vm1177_vm2 = vc.u32 %v1175_v24, %v1171_v6  ;;  %v1128_v26 = vsel %vm1124_vm7, %v3154_v57, %v1127_v9  ;;  %v1159_v28 = vadd.s32 %v1158_v29, %v1148_v15 }
  0xda   : > { %v1055_v13 = vmul.f32 %v1054_v59, %v1052_v63  ;;  %v1178_v54 = vsel %vm1177_vm2, 1, %v2586_v46  ;;  %v1059_v36 = vsel %vm936_vm13, %v1058_v35, %v3120_v21  ;;  %v1172_v58 = vshrl.u32 %v1167_v62, 16 }
  0xdb   : > { %v1180_v39 = vadd.s32 %v1178_v54, %v1176_v5  ;;  %vm465_vm3 = vcmp.eq.s32.totalorder %v3195_v47, 2  ;;  %v3249_v43 = vadd.s32 %v1159_v28, %v1150_v23  ;;  %v3251_v18 = vadd.s32 %v1175_v24, %v1171_v6 }
  0xdc   : > { %v1056_v1 = vxor.u32 2147483648, %v1055_v13  ;;  %v463_v57 = vxor.u32 2147483648, %v3207_v40  ;;  %v3256_v46 = vmul.f32 %v3231_v32, %v3231_v32  ;;  %v1129_v21 = vsel %vm1123_vm9, %v1126_v0, %v1128_v26 }
  0xdd   : > { %v1181_v48 = vadd.s32 %v1180_v39, %v1170_v14  ;;  %vm462_vm4 = vcmp.eq.s32.totalorder %v3195_v47, 0  ;;  %v1061_v60 = vsel %vm3213_vm14, 0, %v1059_v36  ;;  %vm461_vm5 = vcmp.lt.s32.totalorder %v3195_v47, 2  ;;  %v2101_v39 = vld [vmem:[%s2826_s25 + $0x8] sm:$0xff] }
  0xde   : > { %v1057_v53 = vsel %vm936_vm13, %v1056_v1, %v1055_v13  ;;  %v467_v31 = vsel %vm465_vm3, %v466_v8, %v3207_v40  ;;  %v770_v50 = vand.u32 3, %v3130_v30  ;;  %v1183_v59 = vmul.u32 %v3166_v11, %v1129_v21 }
  0xdf   : > { %v1060_v33 = vsel %vm3213_vm14, %v2852_v4, %v1057_v53  ;;  %v1182_v51 = vadd.s32 %v1181_v48, %v1172_v58  ;;  %vm1185_vm6 = vc.u32 %v3249_v43, %v3251_v18  ;;  %v464_v10 = vsel %vm462_vm4, %v3175_v52, %v463_v57 }
  0xe0   : > { %v1062_v16 = vmul.f32 %v1060_v33, %v1060_v33  ;;  %v607_v61 = vmul.f32 -0.00019511016, %v3256_v46  ;;  %v1078_v25 = vadd.s32 3, %v1061_v60  ;;  %vm458_vm7 = vweird.f32 %v2850_v3  ;;  %v2102_v3 = vld [vmem:[%s2826_s25 + $0xd0] sm:$0xff] }
  0xe1   : > { %v1186_v35 = vadd.s32 1, %v1182_v51  ;;  %vm772_vm8 = vcmp.eq.s32.totalorder %v770_v50, 0  ;;  %vm775_vm9 = vcmp.eq.s32.totalorder %v770_v50, 2  ;;  %v468_v37 = vsel %vm461_vm5, %v464_v10, %v467_v31 }
  0xe2   : > { %v1063_v49 = vmul.f32 -0.001358992, %v1062_v16  ;;  %v1070_v34 = vmul.f32 -0.00019511016, %v1062_v16  ;;  %v595_v12 = vsub.s32 4, %v3022_v2  ;;  %v1079_v22 = vand.u32 3, %v1078_v25 }
  0xe3   : > { %v1187_v30 = vsel %vm1185_vm6, %v1186_v35, %v1182_v51  ;;  %v600_v42 = vmul.f32 -0.001358992, %v3256_v46  ;;  %v608_v15 = vadd.f32 0.008332121, %v607_v61  ;;  %v3280_v9 = vsel %vm458_vm7, nan, %v468_v37  ;;  %v1553_v51 = vld [vmem:[%s2826_s25] sm:$0xff] }
  0xe4   : > { %v1064_v56 = vadd.f32 0.041655596, %v1063_v49  ;;  %v1071_v41 = vadd.f32 0.008332121, %v1070_v34  ;;  %v1188_v44 = vadd.s32 %v1187_v30, %v1183_v59  ;;  %vm771_vm11 = vcmp.lt.s32.totalorder %v770_v50, 2  ;;  %v2104_v35 = vld [vmem:[%s2826_s25 + $0x10] sm:$0xff] }
  0xe5   : > { %v774_v47 = vsel %vm772_vm8, %v3175_v52, %v463_v57  ;;  %v777_v55 = vsel %vm775_vm9, %v466_v8, %v3207_v40  ;;  %v1389_v23 = vand.u32 3, %v1061_v60  ;;  %v596_v29 = vsel %vm473_vm10, %v595_v12, %v3022_v2 }
  0xe6   : > { %v1065_v38 = vmul.f32 %v1064_v56, %v1062_v16  ;;  %v1072_v62 = vmul.f32 %v1071_v41, %v1062_v16  ;;  %v1189_v45 = vadd.s32 536870912, %v1188_v44  ;;  %v601_v5 = vadd.f32 0.041655596, %v600_v42  ;;  %v2103_v56 = vld [vmem:[%s2826_s25 + $0x198] sm:$0xff]  ;;  %v2100_v42 = vld [vmem:[%s2826_s25 + $0x190] sm:$0xff] }
  0xe7   : > { %v609_v0 = vmul.f32 %v608_v15, %v3256_v46  ;;  %vm1084_vm13 = vcmp.eq.s32.totalorder %v1079_v22, 2  ;;  %v778_v14 = vsel %vm771_vm11, %v774_v47, %v777_v55  ;;  %vm1080_vm14 = vcmp.lt.s32.totalorder %v1079_v22, 2 }
  0xe8   : > { %v1066_v11 = vadd.f32 -0.4999988, %v1065_v38  ;;  %v1073_v63 = vadd.f32 -0.16666654, %v1072_v62  ;;  %v3288_v1 = vshrl.u32 %v1189_v45, 30  ;;  %vm1081_vm15 = vcmp.eq.s32.totalorder %v1079_v22, 0 }
  0xe9   : > { %vm1391_vm0 = vcmp.eq.s32.totalorder %v1389_v23, 0  ;;  %v1561_v40 = vmul.f32 1.4142135, %v3280_v9  ;;  %vm1394_vm10 = vcmp.eq.s32.totalorder %v1389_v23, 2  ;;  %v598_v2 = vsel %vm3202_vm12, 0, %v596_v29  ;;  %v2099_v62 = vld [vmem:[%s2826_s25 + $0xc8] sm:$0xff] }
  0xea   : > { %v1067_v6 = vmul.f32 %v1066_v11, %v1062_v16  ;;  %v1074_v13 = vmul.f32 %v1073_v63, %v1062_v16  ;;  %v1191_v52 = vshll.u32 %v3288_v1, 30  ;;  %v602_v36 = vmul.f32 %v601_v5, %v3256_v46  ;;  %v2106_v22 = vld [vmem:[%s2826_s25 + $0x1a0] sm:$0xff] }
  0xeb   : > { %v3303_v58 = vsel %vm458_vm7, nan, %v778_v14  ;;  %vm1077_vm1 = vweird.f32 %v2852_v4  ;;  %vm1390_vm12 = vcmp.lt.s32.totalorder %v1389_v23, 2  ;;  %v615_v60 = vadd.s32 3, %v598_v2  ;;  %v2108_v5 = vld [vmem:[%s2826_s25 + $0xe0] sm:$0xff] }
  0xec   : > { %v1068_v20 = vadd.f32 1.0, %v1067_v6  ;;  %v1075_v24 = vadd.f32 1.0, %v1074_v13  ;;  %v3296_v54 = vsub.s32 %v1188_v44, %v1191_v52  ;;  %v1564_v34 = vmul.f32 %v2101_v39, %v1561_v40  ;;  %v2105_v44 = vld [vmem:[%s2826_s25 + $0xd8] sm:$0xff] }
  0xed   : > { %v603_v31 = vadd.f32 -0.4999988, %v602_v36  ;;  %v1574_v41 = vmul.f32 1.4142135, %v3303_v58  ;;  %v1568_v25 = vmul.f32 %v2102_v3, %v1561_v40  ;;  %v3323_v30 = vand.u32 3, %v615_v60  ;;  %v2111_v3 = vld [vmem:[%s2826_s25 + $0xe8] sm:$0xff] }
  0xee   : > { %v1076_v53 = vmul.f32 %v1075_v24, %v1060_v33  ;;  %v1085_v26 = vxor.u32 2147483648, %v1068_v20  ;;  %v610_v33 = vadd.f32 -0.16666654, %v609_v0  ;;  %vm1193_vm2 = vcmp.lt.s32.totalorder %v3296_v54, 0 }
  0xef   : > { %v1194_v57 = vsub.s32 0, %v3296_v54  ;;  %v1184_v37 = vadd.s32 %v3251_v18, %v3249_v43  ;;  %v1565_v11 = vadd.f32 %v1564_v34, %v1553_v51  ;;  %v1572_v63 = vmul.f32 %v2103_v56, %v1561_v40  ;;  %v2107_v18 = vld [vmem:[%s2826_s25 + $0x18] sm:$0xff]  ;;  %v2109_v40 = vld [vmem:[%s2826_s25 + $0x1a8] sm:$0xff] }
  0xf0   : > { %v1082_v8 = vxor.u32 2147483648, %v1076_v53  ;;  %v1086_v28 = vsel %vm1084_vm13, %v1085_v26, %v1076_v53  ;;  %v1396_v48 = vsel %vm1394_vm10, %v1085_v26, %v1076_v53  ;;  %v611_v59 = vmul.f32 %v610_v33, %v3256_v46  ;;  %v2113_v56 = vld [vmem:[%s2826_s25 + $0x28] sm:$0xff] }
  0xf1   : > { %v1195_v49 = vsel %vm1193_vm2, %v1194_v57, %v3296_v54  ;;  %v1577_v15 = vmul.f32 %v2104_v35, %v1574_v41  ;;  %v604_v13 = vmul.f32 %v603_v31, %v3256_v46  ;;  %v1569_v43 = vadd.f32 %v2099_v62, %v1568_v25  ;;  %v2112_v31 = vld [vmem:[%s2826_s25 + $0x1b0] sm:$0xff] }
  0xf2   : > { %v1083_v16 = vsel %vm1081_vm15, %v1068_v20, %v1082_v8  ;;  %v1393_v21 = vsel %vm1391_vm0, %v1068_v20, %v1082_v8  ;;  %v1196_v50 = vclz %v1195_v49  ;;  %v612_v45 = vadd.f32 1.0, %v611_v59  ;;  %v2110_v8 = vld [vmem:[%s2826_s25 + $0x20] sm:$0xff]  ;;  %v2114_v62 = vld [vmem:[%s2826_s25 + $0xf0] sm:$0xff] }
  0xf3   : > { %v1087_v17 = vsel %vm1080_vm14, %v1083_v16, %v1086_v28  ;;  %v1397_v61 = vsel %vm1390_vm12, %v1393_v21, %v1396_v48  ;;  %v1581_v24 = vmul.f32 %v2105_v44, %v1574_v41  ;;  %v1573_v23 = vadd.f32 %v2100_v42, %v1572_v63  ;;  %v2115_v44 = vld [vmem:[%s2826_s25 + $0x1b8] sm:$0xff] }
  0xf4   : > { %v3319_v10 = vsel %vm1077_vm1, nan, %v1087_v17  ;;  %v2091_v38 = vadd.s32 4294967294, %v1196_v50  ;;  %v3330_v12 = vsel %vm1077_vm1, nan, %v1397_v61  ;;  %v1585_v29 = vmul.f32 %v2106_v22, %v1574_v41 }
  0xf5   : > { %v1587_v6 = vmul.f32 1.4142135, %v3319_v10  ;;  %v1600_v0 = vmul.f32 1.4142135, %v3330_v12  ;;  %v1613_v14 = vmul.f32 %v3330_v12, %v3303_v58  ;;  %v1578_v26 = vadd.f32 %v1577_v15, %v1565_v11 }
  0xf6   : > { %vm2092_vm3 = vcmp.lt.s32.totalorder %v2091_v38, 0  ;;  %v605_v28 = vadd.f32 1.0, %v604_v13  ;;  %vm618_vm4 = vcmp.eq.s32.totalorder %v3323_v30, 0  ;;  %vm621_vm5 = vcmp.eq.s32.totalorder %v3323_v30, 2 }
  0xf7   : > { %v1199_v47 = vsel %vm2092_vm3, 0, %v2091_v38  ;;  %v1590_v52 = vmul.f32 %v2107_v18, %v1587_v6  ;;  %v1582_v39 = vadd.f32 %v1581_v24, %v1569_v43  ;;  %v1594_v16 = vmul.f32 %v2108_v5, %v1587_v6  ;;  %v2116_v43 = vld [vmem:[%s2826_s25 + $0x30] sm:$0xff]  ;;  %v2118_v5 = vld [vmem:[%s2826_s25 + $0x1c0] sm:$0xff] }
  0xf8   : > { %v1200_v55 = vsub.s32 32, %v1199_v47  ;;  %v1201_v20 = vshll.u32 %v3296_v54, %v1199_v47  ;;  %v1204_v4 = vsub.s32 4294967266, %v1199_v47  ;;  %v3346_v54 = vand.u32 3, %v598_v2 }
  0xf9   : > { %v613_v57 = vmul.f32 %v612_v45, %v3231_v32  ;;  %vm617_vm6 = vcmp.lt.s32.totalorder %v3323_v30, 2  ;;  %v1586_v17 = vadd.f32 %v1585_v29, %v1573_v23  ;;  %v1598_v21 = vmul.f32 %v2109_v40, %v1587_v6 }
  0xfa   : > { %v1202_v46 = vshrl.u32 %v1184_v37, %v1200_v55  ;;  %v1205_v53 = vadd.s32 127, %v1204_v4  ;;  %v1603_v48 = vmul.f32 %v2110_v8, %v1600_v0  ;;  %v1591_v34 = vadd.f32 %v1590_v52, %v1578_v26  ;;  %v2117_v4 = vld [vmem:[%s2826_s25 + $0xf8] sm:$0xff] }
  0xfb   : > { %v1614_v2 = vmul.f32 2.0, %v1613_v14  ;;  %v622_v50 = vxor.u32 2147483648, %v605_v28  ;;  %vm926_vm7 = vcmp.eq.s32.totalorder %v3346_v54, 0  ;;  %v1214_v51 = vsub.s32 4, %v3288_v1 }
  0xfc   : > { %v1203_v36 = vor.u32 %v1202_v46, %v1201_v20  ;;  %v1206_v33 = vshll.u32 %v1205_v53, 23  ;;  %v1627_v32 = vmul.f32 %v3319_v10, %v3303_v58  ;;  %vm614_vm8 = vweird.f32 %v2857_v7 }
  0xfd   : > { %vm925_vm9 = vcmp.lt.s32.totalorder %v3346_v54, 2  ;;  %v1595_v59 = vadd.f32 %v1594_v16, %v1582_v39  ;;  %v1607_v61 = vmul.f32 %v2111_v3, %v1600_v0  ;;  %v619_v25 = vxor.u32 2147483648, %v613_v57  ;;  %v2120_v39 = vld [vmem:[%s2826_s25 + $0x100] sm:$0xff] }
  0xfe   : > { %v1207_v60 = vor.u32 4788187, %v1206_v33  ;;  %v1210_v49 = vcvt.s32.f32 %v1203_v36  ;;  %vm929_vm11 = vcmp.eq.s32.totalorder %v3346_v54, 2  ;;  %v1599_v35 = vadd.f32 %v1598_v21, %v1586_v17 }
  0xff   : > { %v1611_v38 = vmul.f32 %v2112_v31, %v1600_v0  ;;  %vm1092_vm13 = vcmp.lt.s32.totalorder %v3077_v27, 0  ;;  %v1604_v11 = vadd.f32 %v1603_v48, %v1591_v34  ;;  %v1617_v63 = vmul.f32 %v2113_v56, %v1614_v2  ;;  %v2121_v48 = vld [vmem:[%s2826_s25 + $0x1c8] sm:$0xff] }
 0x100   : > { %v1208_v41 = vand.u32 2147483647, %v1207_v60  ;;  %v623_v42 = vsel %vm621_vm5, %v622_v50, %v613_v57  ;;  %v1215_v15 = vsel %vm1092_vm13, %v1214_v51, %v3288_v1  ;;  %v1628_v22 = vmul.f32 2.0, %v1627_v32  ;;  %v2122_v51 = vld [vmem:[%s2826_s25 + $0x40] sm:$0xff]  ;;  %v2123_v32 = vld [vmem:[%s2826_s25 + $0x108] sm:$0xff] }
 0x101   : > { %v1641_v6 = vmul.f32 %v3330_v12, %v3280_v9  ;;  %vm1091_vm14 = vcmp.le.f32.partialorder %v1090_v19, 0.7853982  ;;  %v1608_v45 = vadd.f32 %v1607_v61, %v1595_v59  ;;  %v1621_v47 = vmul.f32 %v2114_v62, %v1614_v2 }
 0x102   : > { %v1211_v37 = vmul.f32 %v1210_v49, %v1208_v41  ;;  %v620_v18 = vsel %vm618_vm4, %v605_v28, %v619_v25  ;;  %v931_v55 = vsel %vm929_vm11, %v622_v50, %v613_v57  ;;  %v1612_v20 = vadd.f32 %v1611_v38, %v1599_v35 }
 0x103   : > { %v1625_v1 = vmul.f32 %v2115_v44, %v1614_v2  ;;  %v928_v24 = vsel %vm926_vm7, %v605_v28, %v619_v25  ;;  %v1217_v23 = vsel %vm1091_vm14, 0, %v1215_v15  ;;  %v1618_v29 = vadd.f32 %v1617_v63, %v1604_v11  ;;  %v2119_v28 = vld [vmem:[%s2826_s25 + $0x38] sm:$0xff]  ;;  %v2124_v25 = vld [vmem:[%s2826_s25 + $0x1d0] sm:$0xff]  ;;  %v2125_v15 = vld [vmem:[%s2826_s25 + $0x48] sm:$0xff] }
 0x104   : > { %v1212_v13 = vxor.u32 2147483648, %v1211_v37  ;;  %v1631_v14 = vmul.f32 %v2116_v43, %v1628_v22  ;;  %v1642_v46 = vmul.f32 2.0, %v1641_v6  ;;  %v1655_v53 = vmul.f32 %v3319_v10, %v3280_v9  ;;  %v2127_v43 = vld [vmem:[%s2826_s25 + $0x1d8] sm:$0xff] }
 0x105   : > { %v624_v26 = vsel %vm617_vm6, %v620_v18, %v623_v42  ;;  %v1622_v40 = vadd.f32 %v1621_v47, %v1608_v45  ;;  %v1635_v8 = vmul.f32 %v2117_v4, %v1628_v22  ;;  %v1626_v36 = vadd.f32 %v1625_v1, %v1612_v20  ;;  %v2126_v45 = vld [vmem:[%s2826_s25 + $0x110] sm:$0xff] }
 0x106   : > { %v1213_v19 = vsel %vm1092_vm13, %v1212_v13, %v1211_v37  ;;  %v1639_v33 = vmul.f32 %v2118_v5, %v1628_v22  ;;  %v932_v16 = vsel %vm925_vm9, %v928_v24, %v931_v55  ;;  %v1234_v21 = vadd.s32 3, %v1217_v23 }
 0x107   : > { %v3384_v0 = vsel %vm1091_vm14, %v3077_v27, %v1213_v19  ;;  %v3399_v30 = vsel %vm614_vm8, nan, %v624_v26  ;;  %v1632_v3 = vadd.f32 %v1631_v14, %v1618_v29  ;;  %v1645_v60 = vmul.f32 %v2119_v28, %v1642_v46  ;;  %v2129_v29 = vld [vmem:[%s2826_s25 + $0x118] sm:$0xff]  ;;  %v2130_v26 = vld [vmem:[%s2826_s25 + $0x1e0] sm:$0xff] }
 0x108   : > { %v1218_v52 = vmul.f32 %v3384_v0, %v3384_v0  ;;  %v1656_v49 = vmul.f32 2.0, %v1655_v53  ;;  %v1636_v2 = vadd.f32 %v1635_v8, %v1622_v40  ;;  %v1649_v50 = vmul.f32 %v2120_v39, %v1642_v46 }
 0x109   : > { %v1640_v54 = vadd.f32 %v1639_v33, %v1626_v36  ;;  %v1653_v56 = vmul.f32 %v2121_v48, %v1642_v46  ;;  %v1235_v61 = vand.u32 3, %v1234_v21  ;;  %v3406_v35 = vsel %vm614_vm8, nan, %v932_v16 }
 0x10a   : > { %v1219_v57 = vmul.f32 -0.001358992, %v1218_v52  ;;  %v1226_v17 = vmul.f32 -0.00019511016, %v1218_v52  ;;  %v1646_v38 = vadd.f32 %v1645_v60, %v1632_v3  ;;  %v1659_v62 = vmul.f32 %v2122_v51, %v1656_v49 }
 0x10b   : > { %v1669_v37 = vmul.f32 1.4142135, %v3399_v30  ;;  %v1650_v44 = vadd.f32 %v1649_v50, %v1636_v2  ;;  %v1663_v42 = vmul.f32 %v2123_v32, %v1656_v49  ;;  %v1543_v22 = vand.u32 3, %v1217_v23  ;;  %v2128_v23 = vld [vmem:[%s2826_s25 + $0x50] sm:$0xff]  ;;  %v2134_v32 = vld [vmem:[%s2826_s25 + $0x60] sm:$0xff] }
 0x10c   : > { %v1220_v34 = vadd.f32 0.041655596, %v1219_v57  ;;  %v1227_v31 = vadd.f32 0.008332121, %v1226_v17  ;;  %v1654_v6 = vadd.f32 %v1653_v56, %v1640_v54  ;;  %v1667_v13 = vmul.f32 %v2124_v25, %v1656_v49  ;;  %v2133_v56 = vld [vmem:[%s2826_s25 + $0x1e8] sm:$0xff] }
 0x10d   : > { %vm1236_vm15 = vcmp.lt.s32.totalorder %v1235_v61, 2  ;;  %vm1237_vm0 = vcmp.eq.s32.totalorder %v1235_v61, 0  ;;  %v1660_v18 = vadd.f32 %v1659_v62, %v1646_v38  ;;  %v1672_v55 = vmul.f32 %v2125_v15, %v1669_v37  ;;  %v2136_v38 = vld [vmem:[%s2826_s25 + $0x1f0] sm:$0xff] }
 0x10e   : > { %v1221_v41 = vmul.f32 %v1220_v34, %v1218_v52  ;;  %v1228_v59 = vmul.f32 %v1227_v31, %v1218_v52  ;;  %v1682_v20 = vmul.f32 1.4142135, %v3406_v35  ;;  %v1664_v24 = vadd.f32 %v1663_v42, %v1650_v44  ;;  %v2131_v34 = vld [vmem:[%s2826_s25 + $0x58] sm:$0xff]  ;;  %v2137_v31 = vld [vmem:[%s2826_s25 + $0x68] sm:$0xff]  ;;  %v2138_v62 = vld [vmem:[%s2826_s25 + $0x130] sm:$0xff] }
 0x10f   : > { %v1676_v19 = vmul.f32 %v2126_v45, %v1669_v37  ;;  %vm1240_vm10 = vcmp.eq.s32.totalorder %v1235_v61, 2  ;;  %vm1548_vm1 = vcmp.eq.s32.totalorder %v1543_v22, 2  ;;  %v1668_v5 = vadd.f32 %v1667_v13, %v1654_v6 }
 0x110   : > { %v1222_v11 = vadd.f32 -0.4999988, %v1221_v41  ;;  %v1229_v63 = vadd.f32 -0.16666654, %v1228_v59  ;;  %v1680_v14 = vmul.f32 %v2127_v43, %v1669_v37  ;;  %vm1545_vm2 = vcmp.eq.s32.totalorder %v1543_v22, 0  ;;  %v2135_v41 = vld [vmem:[%s2826_s25 + $0x128] sm:$0xff] }
 0x111   : > { %vm1544_vm12 = vcmp.lt.s32.totalorder %v1543_v22, 2  ;;  %v1673_v40 = vadd.f32 %v1672_v55, %v1660_v18  ;;  %v1685_v8 = vmul.f32 %v2128_v23, %v1682_v20  ;;  %v1689_v28 = vmul.f32 %v2129_v29, %v1682_v20  ;;  %v2144_v23 = vld [vmem:[%s2826_s25 + $0x140] sm:$0xff] }
 0x112   : > { %v1223_v47 = vmul.f32 %v1222_v11, %v1218_v52  ;;  %v1230_v7 = vmul.f32 %v1229_v63, %v1218_v52  ;;  %v1721_v52 = vmul.f32 %v3330_v12, %v3406_v35  ;;  %v1677_v16 = vadd.f32 %v1676_v19, %v1664_v24  ;;  %v2139_v63 = vld [vmem:[%s2826_s25 + $0x1f8] sm:$0xff] }
 0x113   : > { %vm1233_vm3 = vweird.f32 %v3077_v27  ;;  %v1693_v57 = vmul.f32 %v2130_v26, %v1682_v20  ;;  %v1749_v3 = vmul.f32 %v3319_v10, %v3406_v35  ;;  %v2132_v27 = vld [vmem:[%s2826_s25 + $0x120] sm:$0xff]  ;;  %v1686_v51 = vadd.f32 %v1685_v8, %v1673_v40  ;;  %v2143_v19 = vld [vmem:[%s2826_s25 + $0x78] sm:$0xff] }
 0x114   : > { %v1224_v1 = vadd.f32 1.0, %v1223_v47  ;;  %v1231_v4 = vadd.f32 1.0, %v1230_v7  ;;  %v1722_v48 = vmul.f32 2.0, %v1721_v52  ;;  %v1690_v54 = vadd.f32 %v1689_v28, %v1677_v16  ;;  %v2140_v47 = vld [vmem:[%s2826_s25 + $0x70] sm:$0xff]  ;;  %v2141_v7 = vld [vmem:[%s2826_s25 + $0x138] sm:$0xff]  ;;  %v2146_v28 = vld [vmem:[%s2826_s25 + $0x80] sm:$0xff] }
 0x115   : > { %v1750_v44 = vmul.f32 2.0, %v1749_v3  ;;  %v1777_v15 = vmul.f32 %v3330_v12, %v3399_v30  ;;  %v2148_v16 = vld [vmem:[%s2826_s25 + $0x210] sm:$0xff] }
 0x116   : > { %v1232_v46 = vmul.f32 %v1231_v4, %v3384_v0  ;;  %v1241_v53 = vxor.u32 2147483648, %v1224_v1  ;;  %v1681_v0 = vadd.f32 %v1680_v14, %v1668_v5  ;;  %v1725_v11 = vmul.f32 %v2137_v31, %v1722_v48  ;;  %v2145_v14 = vld [vmem:[%s2826_s25 + $0x208] sm:$0xff]  ;;  %v2151_v31 = vld [vmem:[%s2826_s25 + $0x218] sm:$0xff] }
 0x117   : > { %v1729_v55 = vmul.f32 %v2138_v62, %v1722_v48  ;;  %v1733_v12 = vmul.f32 %v2139_v63, %v1722_v48  ;;  %v1761_v3 = vmul.f32 %v2145_v14, %v1750_v44  ;;  %v2154_v62 = vld [vmem:[%s2826_s25 + $0x220] sm:$0xff] }
 0x118   : > { %v1238_v36 = vxor.u32 2147483648, %v1232_v46  ;;  %v1242_v33 = vsel %vm1240_vm10, %v1241_v53, %v1232_v46  ;;  %v1550_v39 = vsel %vm1548_vm1, %v1241_v53, %v1232_v46  ;;  %v1694_v59 = vadd.f32 %v1693_v57, %v1681_v0 }
 0x119   : > { %v1778_v0 = vmul.f32 2.0, %v1777_v15  ;;  %v1805_v57 = vmul.f32 %v3319_v10, %v3399_v30  ;;  %v2155_v15 = vld [vmem:[%s2826_s25 + $0x98] sm:$0xff] }
 0x11a   : > { %v1239_v17 = vsel %vm1237_vm0, %v1224_v1, %v1238_v36  ;;  %v1547_v21 = vsel %vm1545_vm2, %v1224_v1, %v1238_v36  ;;  %v2142_v1 = vld [vmem:[%s2826_s25 + $0x200] sm:$0xff]  ;;  %v2147_v36 = vld [vmem:[%s2826_s25 + $0x148] sm:$0xff] }
 0x11b   : > { %v1243_v60 = vsel %vm1236_vm15, %v1239_v17, %v1242_v33  ;;  %v1551_v49 = vsel %vm1544_vm12, %v1547_v21, %v1550_v39  ;;  %v1753_v33 = vmul.f32 %v2143_v19, %v1750_v44  ;;  %v1757_v39 = vmul.f32 %v2144_v23, %v1750_v44 }
 0x11c   : > { %v3428_v2 = vsel %vm1233_vm3, nan, %v1243_v60  ;;  %v3430_v50 = vsel %vm1233_vm3, nan, %v1551_v49  ;;  %v2149_v60 = vld [vmem:[%s2826_s25 + $0x88] sm:$0xff]  ;;  %v2150_v49 = vld [vmem:[%s2826_s25 + $0x150] sm:$0xff] }
 0x11d   : > { %v1695_v61 = vmul.f32 1.4142135, %v3428_v2  ;;  %v1708_v25 = vmul.f32 1.4142135, %v3430_v50  ;;  %v1735_v37 = vmul.f32 %v3430_v50, %v3303_v58  ;;  %v1763_v42 = vmul.f32 %v3428_v2, %v3303_v58 }
 0x11e   : > { %v1791_v53 = vmul.f32 %v3430_v50, %v3280_v9  ;;  %v1861_v23 = vmul.f32 %v3430_v50, %v3399_v30 }
 0x11f   : > { %v1698_v22 = vmul.f32 %v2131_v34, %v1695_v61  ;;  %v1702_v6 = vmul.f32 %v2132_v27, %v1695_v61  ;;  %v1706_v13 = vmul.f32 %v2133_v56, %v1695_v61  ;;  %v1711_v45 = vmul.f32 %v2134_v32, %v1708_v25  ;;  %v2153_v61 = vld [vmem:[%s2826_s25 + $0x158] sm:$0xff] }
 0x120   : > { %v1715_v43 = vmul.f32 %v2135_v41, %v1708_v25  ;;  %v1719_v18 = vmul.f32 %v2136_v38, %v1708_v25  ;;  %v1736_v20 = vmul.f32 2.0, %v1735_v37  ;;  %v1764_v46 = vmul.f32 2.0, %v1763_v42 }
 0x121   : > { %v1699_v4 = vadd.f32 %v1698_v22, %v1686_v51  ;;  %v1703_v58 = vadd.f32 %v1702_v6, %v1690_v54  ;;  %v1707_v24 = vadd.f32 %v1706_v13, %v1694_v59  ;;  %v1792_v51 = vmul.f32 2.0, %v1791_v53  ;;  %v2152_v59 = vld [vmem:[%s2826_s25 + $0x90] sm:$0xff]  ;;  %v2156_v22 = vld [vmem:[%s2826_s25 + $0x160] sm:$0xff] }
 0x122   : > { %v1739_v29 = vmul.f32 %v2140_v47, %v1736_v20  ;;  %v1743_v5 = vmul.f32 %v2141_v7, %v1736_v20  ;;  %v1747_v8 = vmul.f32 %v2142_v1, %v1736_v20  ;;  %v1767_v34 = vmul.f32 %v2146_v28, %v1764_v46  ;;  %v2158_v1 = vld [vmem:[%s2826_s25 + $0xa0] sm:$0xff]  ;;  %v2162_v53 = vld [vmem:[%s2826_s25 + $0x170] sm:$0xff] }
 0x123   : > { %v1712_v26 = vadd.f32 %v1711_v45, %v1699_v4  ;;  %v1716_v52 = vadd.f32 %v1715_v43, %v1703_v58  ;;  %v1720_v40 = vadd.f32 %v1719_v18, %v1707_v24  ;;  %v1771_v27 = vmul.f32 %v2147_v36, %v1764_v46  ;;  %v2157_v45 = vld [vmem:[%s2826_s25 + $0x228] sm:$0xff] }
 0x124   : > { %v1819_v54 = vmul.f32 %v3428_v2, %v3280_v9  ;;  %v1775_v41 = vmul.f32 %v2148_v16, %v1764_v46  ;;  %v1781_v25 = vmul.f32 %v2149_v60, %v1778_v0  ;;  %v1785_v38 = vmul.f32 %v2150_v49, %v1778_v0  ;;  %v2159_v4 = vld [vmem:[%s2826_s25 + $0x168] sm:$0xff]  ;;  %v2164_v16 = vld [vmem:[%s2826_s25 + $0xb0] sm:$0xff] }
 0x125   : > { %v1726_v17 = vadd.f32 %v1725_v11, %v1712_v26  ;;  %v1730_v21 = vadd.f32 %v1729_v55, %v1716_v52  ;;  %v1734_v48 = vadd.f32 %v1733_v12, %v1720_v40  ;;  %v1806_v37 = vmul.f32 2.0, %v1805_v57  ;;  %v2160_v12 = vld [vmem:[%s2826_s25 + $0x230] sm:$0xff]  ;;  %v2161_v46 = vld [vmem:[%s2826_s25 + $0xa8] sm:$0xff]  ;;  %v2163_v40 = vld [vmem:[%s2826_s25 + $0x238] sm:$0xff] }
 0x126   : > { %v1833_v11 = vmul.f32 %v3430_v50, %v3406_v35  ;;  %v1789_v42 = vmul.f32 %v2151_v31, %v1778_v0  ;;  %v1795_v6 = vmul.f32 %v2152_v59, %v1792_v51  ;;  %v1799_v13 = vmul.f32 %v2153_v61, %v1792_v51  ;;  %v2165_v0 = vld [vmem:[%s2826_s25 + $0x178] sm:$0xff]  ;;  %v2170_v59 = vld [vmem:[%s2826_s25 + $0xc0] sm:$0xff]  ;;  %v2171_v61 = vld [vmem:[%s2826_s25 + $0x188] sm:$0xff] }
 0x127   : > { %v1740_v56 = vadd.f32 %v1739_v29, %v1726_v17  ;;  %v1744_v10 = vadd.f32 %v1743_v5, %v1730_v21  ;;  %v1748_v32 = vadd.f32 %v1747_v8, %v1734_v48  ;;  %v1820_v47 = vmul.f32 2.0, %v1819_v54  ;;  %v2166_v21 = vld [vmem:[%s2826_s25 + $0x240] sm:$0xff] }
 0x128   : > { %v1847_v7 = vmul.f32 %v3428_v2, %v3406_v35  ;;  %v1803_v20 = vmul.f32 %v2154_v62, %v1792_v51  ;;  %v1809_v58 = vmul.f32 %v2155_v15, %v1806_v37  ;;  %v1813_v24 = vmul.f32 %v2156_v22, %v1806_v37  ;;  %v2169_v51 = vld [vmem:[%s2826_s25 + $0x248] sm:$0xff]  ;;  %v2172_v62 = vld [vmem:[%s2826_s25 + $0x250] sm:$0xff] }
 0x129   : > { %v1754_v63 = vadd.f32 %v1753_v33, %v1740_v56  ;;  %v1758_v9 = vadd.f32 %v1757_v39, %v1744_v10  ;;  %v1762_v44 = vadd.f32 %v1761_v3, %v1748_v32  ;;  %v1834_v19 = vmul.f32 2.0, %v1833_v11 }
 0x12a   : > { %v1817_v14 = vmul.f32 %v2157_v45, %v1806_v37  ;;  %v1823_v26 = vmul.f32 %v2158_v1, %v1820_v47  ;;  %v1827_v52 = vmul.f32 %v2159_v4, %v1820_v47  ;;  %v1848_v8 = vmul.f32 2.0, %v1847_v7  ;;  %v1890_v1 = vld [vmem:[%s2844_s18] sm:$0xff]  ;;  %v2173_v4 = vld [vmem:[%s2844_s18 + $0x8] sm:$0xff] }
 0x12b   : > { %v1768_v43 = vadd.f32 %v1767_v34, %v1754_v63  ;;  %v1772_v18 = vadd.f32 %v1771_v27, %v1758_v9  ;;  %v1776_v55 = vadd.f32 %v1775_v41, %v1762_v44  ;;  %v1875_v28 = vmul.f32 %v3428_v2, %v3399_v30  ;;  %v2167_v30 = vld [vmem:[%s2826_s25 + $0xb8] sm:$0xff]  ;;  %v2168_v2 = vld [vmem:[%s2826_s25 + $0x180] sm:$0xff]  ;;  %s2441_s25 = scalar_lea.hbm %s2440_s21, 24 }
 0x12c   : > { %v1831_v39 = vmul.f32 %v2160_v12, %v1820_v47  ;;  %v1837_v57 = vmul.f32 %v2161_v46, %v1834_v19  ;;  %v1841_v17 = vmul.f32 %v2162_v53, %v1834_v19  ;;  %v1862_v48 = vmul.f32 2.0, %v1861_v23  ;;  %p2442_p10 = scmp.ne.s32.totalorder %s2440_s21, %s2441_s25  ;;  %p2447_p0 = scmp.lt.s32.totalorder %s2445_s6, %s2441_s25 }
 0x12d   : > { %v1782_v29 = vadd.f32 %v1781_v25, %v1768_v43  ;;  %v1786_v35 = vadd.f32 %v1785_v38, %v1772_v18  ;;  %v1790_v5 = vadd.f32 %v1789_v42, %v1776_v55  ;;  %v1845_v34 = vmul.f32 %v2163_v40, %v1834_v19  ;;  %v1889_v43 = vld [vmem:[%s269_s29] sm:$0xff] }
 0x12e   : > { %v1851_v27 = vmul.f32 %v2164_v16, %v1848_v8  ;;  %v1855_v31 = vmul.f32 %v2165_v0, %v1848_v8  ;;  %v1876_v54 = vmul.f32 2.0, %v1875_v28  ;;  %v1859_v41 = vmul.f32 %v2166_v21, %v1848_v8  ;;  %p2443_p13 = pnand %p2442_p10, %p2781_p8  ;;  %p2448_p12 = por %p2447_p0, %p2446_p11 }
 0x12f   : > { %v1796_v36 = vadd.f32 %v1795_v6, %v1782_v29  ;;  %v1800_v50 = vadd.f32 %v1799_v13, %v1786_v35  ;;  %v1804_v33 = vadd.f32 %v1803_v20, %v1790_v5  ;;  %v1865_v25 = vmul.f32 %v2167_v30, %v1862_v48 }
 0x130   : > { %v1869_v38 = vmul.f32 %v2168_v2, %v1862_v48  ;;  %v1873_v9 = vmul.f32 %v2169_v51, %v1862_v48  ;;  %v1879_v44 = vmul.f32 %v2170_v59, %v1876_v54  ;;  %v1883_v42 = vmul.f32 %v2171_v61, %v1876_v54  ;;  %p2444_p7 = pneg %p2443_p13 }
 0x131   : > { %v1810_v3 = vadd.f32 %v1809_v58, %v1796_v36  ;;  %v1814_v60 = vadd.f32 %v1813_v24, %v1800_v50  ;;  %v1818_v49 = vadd.f32 %v1817_v14, %v1804_v33  ;;  %v1887_v13 = vmul.f32 %v2172_v62, %v1876_v54  ;;  %v2175_v58 = vld [vmem:[%s2844_s18 + $0x10] sm:$0xff] }
 0x132   : > { %p2449_p1 = pnand %p2448_p12, %p2444_p7 }
 0x133   : > { %v1824_v56 = vadd.f32 %v1823_v26, %v1810_v3  ;;  %v1828_v10 = vadd.f32 %v1827_v52, %v1814_v60  ;;  %v1832_v32 = vadd.f32 %v1831_v39, %v1818_v49 }
 0x135   : > { %v1838_v37 = vadd.f32 %v1837_v57, %v1824_v56  ;;  %v1842_v11 = vadd.f32 %v1841_v17, %v1828_v10  ;;  %v1846_v63 = vadd.f32 %v1845_v34, %v1832_v32 }
 0x137   : > { %v1852_v15 = vadd.f32 %v1851_v27, %v1838_v37  ;;  %v1856_v22 = vadd.f32 %v1855_v31, %v1842_v11  ;;  %v1860_v6 = vadd.f32 %v1859_v41, %v1846_v63 }
 0x139   : > { %v1866_v45 = vadd.f32 %v1865_v25, %v1852_v15  ;;  %v1870_v47 = vadd.f32 %v1869_v38, %v1856_v22  ;;  %v1874_v7 = vadd.f32 %v1873_v9, %v1860_v6 }
 0x13b   : > { %v1880_v18 = vadd.f32 %v1879_v44, %v1866_v45  ;;  %v1884_v55 = vadd.f32 %v1883_v42, %v1870_v47  ;;  %v1888_v20 = vadd.f32 %v1887_v13, %v1874_v7 }
 0x13d   : > { %v1891_v24 = vmul.f32 %v1889_v43, %v1880_v18  ;;  %v1896_v12 = vmul.f32 %v1889_v43, %v1884_v55  ;;  %v1901_v19 = vmul.f32 %v1889_v43, %v1888_v20 }
 0x13f   : > { %v1892_v23 = vadd.f32 %v1891_v24, %v1890_v1  ;;  %v1897_v29 = vadd.f32 %v2173_v4, %v1896_v12  ;;  %v1902_v35 = vadd.f32 %v2175_v58, %v1901_v19 }
 0x141   : > { %1893 = vst [vmem:[%s2844_s18] sm:$0xff] %v1892_v23 }
 0x142   : > { %2174 = vst [vmem:[%s2844_s18 + $0x8] sm:$0xff] %v1897_v29 }
 0x143   : > { %2176 = vst [vmem:[%s2844_s18 + $0x10] sm:$0xff] %v1902_v35 }
 0x144   : > { %2452 = shalt.err (!%p2449_p1)
}
 0x145   : > { %s2587_s22 = smov 128   ;;  %s2588_s4 = smov 8  }
 0x146   : > { %2193 = dma.vmem_to_hbm [thread:$0]  (%p2781_p8), %s1919_s1, 384, %s1921_s12, %s1905_s20, %s2587_s22, %s2587_s22, %s2588_s4  }
 0x147 PF: > { %s3638_s9 = sld [smem:[#allocation19_spill]] }
 0x148   : > { %s3639_s10 = sld [smem:[#allocation12_spill]] }
 0x14d   : > { %p2210_p3 = scmp.ge.s32.totalorder %s3638_s9, 2 }
 0x14e   : > { %s1935_s18 = sand.u32 1, %s3639_s10  }
 0x14f   : > { %p2206_p4 = pnand %p2210_p3, %p2791_p2  ;;  %s1936_s26 = scalar_lea.sflag [#allocation4], %s1935_s18 }
 0x151   : > { %p2207_p6 = pneg %p2206_p4 }
 0x153   : > { %2518 = dma.done.wait (%p2207_p6), %s1936_s26, 384  }
 0x154   : > { %2520 = vsyncadd (%p2207_p6), %s1936_s26, 4294966912  ;;  %s22_s25 = sadd.s32 1, %s3638_s9   ;;  %s3642_s12 = sld [smem:[#allocation13_spill]] }
 0x155   : > { %p3523_p5 = scmp.ge.s32.totalorder %s22_s25, 10   ;;  %s3643_s13 = sld [smem:[#allocation14_spill]] }
 0x156   : > { %s3644_s14 = sld [smem:[#allocation24_spill]]  ;;  %s3651_s15 = smov %s2539_s16 }
 0x157   : > { %s3645_s11 = sld [smem:[#allocation21_spill]]  ;;  %s3652_s16 = smov %s2543_s17 }
 0x158   : > { %s3646_s3 = sld [smem:[#allocation15_spill]]  ;;  %s3654_s18 = smov %s2551_s19 }
 0x159   : > { %s3647_s20 = sld [smem:[#allocation25_spill]]  ;;  %s3656_s21 = smov %s2567_s23 }
 0x15a   : > { %s3648_s22 = sld [smem:[#allocation18_spill]] }
 0x15b   : > { %s3649_s7 = sld [smem:[#allocation20_spill]] }
 0x15c   : > { %s3650_s24 = sld [smem:[#allocation22_spill]] }
 0x15d   : > { %s3653_s17 = smov %s3645_s11  ;;  %21 = sbr.rel (!%p3523_p5) target bundleno = 15 (0xf), region = 182 }
 0x15e   : > { %s3655_s19 = smov %s3646_s3 }
 0x161   : > { %s3657_s23 = smov %s3649_s7 }
 0x162   :  { %1942 = vsyncpa [#allocation3], 1 }
 0x163   :  { %1944 = vsyncpa [#allocation3 + $0x1], 1 }
 0x164   :  { %1945 = vsyncpa [#allocation6], 1 }
 0x165   :  { %1947 = vsyncpa [#allocation6 + $0x1], 1 }
 0x166   :  { %1948 = vsyncpa [#allocation4], 1 }
 0x167   :  { %1950 = vsyncpa [#allocation4 + $0x1], 1 }

</bundles_post_ra>
